<compile_context>
chip_gen: v6e
topology: v6e:2x2x1
jax: 0.10.0
libtpu: 0.0.40
codegen_flags: <defaults>
</compile_context>

<pallas_src>
import functools

import jax
import jax.numpy as jnp
from jax.experimental import pallas as pl
from jax.experimental.pallas import tpu as pltpu


def _round_up(x, m):
    return (x + m - 1) // m * m


def _vae_kernel(x_ref, eps_ref,
                w1_ref, b1_ref,
                wms_ref, bms_ref,
                wz_ref, bz_ref,
                wout_ref, bout_ref,
                xrec_ref, ms_ref):
    """Full VAE forward pass for one batch tile."""
    cdt = w1_ref.dtype            # matmul compute dtype (f32 or bf16)
    z_p = eps_ref.shape[-1]       # padded latent width (multiple of 128)

    x = x_ref[...]

    # ----- Encoder -----
    h = jnp.dot(x, w1_ref[...], preferred_element_type=jnp.float32) + b1_ref[...]
    h = jnp.maximum(h, 0.0)                                   # ReLU (f32)

    # Fused mu || sigma projection: one MXU pass, split at a 128-lane boundary.
    ms = jnp.dot(h.astype(cdt), wms_ref[...],
                 preferred_element_type=jnp.float32) + bms_ref[...]
    mu = ms[:, :z_p]
    sigma = ms[:, z_p:]

    # ----- Re-parameterization trick (eps ~ U[0,1), torch.rand_like) -----
    z = mu + sigma * eps_ref[...]

    # ----- Decoder -----
    h2 = jnp.dot(z.astype(cdt), wz_ref[...],
                 preferred_element_type=jnp.float32) + bz_ref[...]
    h2 = jnp.maximum(h2, 0.0)                                 # ReLU (f32)

    logits = jnp.dot(h2.astype(cdt), wout_ref[...],
                     preferred_element_type=jnp.float32) + bout_ref[...]
    # sigmoid: exp on EUP, approximate reciprocal also on EUP (frees VALU).
    xrec = pl.reciprocal(1.0 + jnp.exp(-logits), approx=True)

    xrec_ref[...] = xrec.astype(xrec_ref.dtype)
    ms_ref[...] = ms.astype(ms_ref.dtype)     # fused mu||sigma, single stream


def _pack_params(p, input_dim, h_dim, z_dim, compute_dtype):
    """Zero-pad lane dims to multiples of 128, fuse mu/sigma, cast weights."""
    in_p = _round_up(input_dim, 128)
    h_p = _round_up(h_dim, 128)
    z_p = _round_up(z_dim, 128)

    def pad_w(w, rows, cols):
        return jnp.zeros((rows, cols), jnp.float32).at[:w.shape[0], :w.shape[1]].set(w)

    def pad_b(b, cols):
        return jnp.zeros((1, cols), jnp.float32).at[0, :b.shape[0]].set(b)

    w1 = pad_w(p["w_img2hid"], in_p, h_p).astype(compute_dtype)
    b1 = pad_b(p["b_img2hid"], h_p)
    # Fused [h_p, 2*z_p] projection; each half padded to a full 128-lane tile.
    wms = jnp.concatenate([pad_w(p["w_mu"], h_p, z_p),
                           pad_w(p["w_sigma"], h_p, z_p)], axis=1).astype(compute_dtype)
    bms = jnp.concatenate([pad_b(p["b_mu"], z_p),
                           pad_b(p["b_sigma"], z_p)], axis=1)
    wz = pad_w(p["w_z2hid"], z_p, h_p).astype(compute_dtype)
    bz = pad_b(p["b_z2hid"], h_p)
    wout = pad_w(p["w_hid2img"], h_p, in_p).astype(compute_dtype)
    bout = pad_b(p["b_hid2img"], in_p)
    return (w1, b1, wms, bms, wz, bz, wout, bout), (in_p, h_p, z_p)


_ACT_VMEM_BUDGET = 16 * 1024 * 1024     # activation-tile VMEM budget (bytes)
_VMEM_LIMIT = 32 * 1024 * 1024          # explicit scoped-VMEM limit (safe on v5e/v6e/v7x)


def _pick_bm(B_p, align, row_bytes):
    """Largest aligned tile that divides B_p and fits the activation budget.

    Prefers an even number of grid steps (>=2) for v7x megacore sharding as
    long as each step still moves a reasonably large tile (>=256 rows)."""
    max_rows = max(align, _ACT_VMEM_BUDGET // max(row_bytes, 1))
    cands = [d for d in range(align, B_p + 1, align)
             if B_p % d == 0 and d <= max_rows]
    if not cands:
        return align
    even = [d for d in cands if (B_p // d) % 2 == 0 and d >= 256]
    return max(even) if even else max(cands)


@functools.partial(jax.jit, static_argnames=("bm", "compute_dtype", "out_dtype"))
def vae_forward(x, eps, params, *, bm=None,
                compute_dtype=jnp.float32, out_dtype=jnp.float32):
    """Full VAE forward pass in one batch-tiled Pallas kernel.

    x:   [B, input_dim] float32 (flattened image)
    eps: [B, z_dim]     float32, U[0,1) noise (torch.rand_like semantics)
    params: dict of Linear weights stored as (in_features, out_features)
            and biases as (out_features,).
    compute_dtype: matmul input dtype (float32 or bfloat16; bf16 is native on
            the MXU of v5e, v6e and v7x -- elementwise math stays f32).
    out_dtype: dtype of x_reconstructed (bf16 halves writeback bytes).
    Returns (x_reconstructed, mu, sigma); mu/sigma are float32.
    """
    B, input_dim = x.shape
    h_dim = params["w_img2hid"].shape[1]
    z_dim = params["w_mu"].shape[1]

    (w1, b1, wms, bms, wz, bz, wout, bout), (in_p, h_p, z_p) = _pack_params(
        params, input_dim, h_dim, z_dim, compute_dtype)

    # bf16 packs two rows per sublane -> 16-row alignment; f32 -> 8.
    align = 16 if jnp.dtype(compute_dtype) == jnp.dtype(jnp.bfloat16) else 8

    x_bytes = jnp.dtype(compute_dtype).itemsize
    o_bytes = jnp.dtype(out_dtype).itemsize
    # Per-batch-row VMEM estimate: double-buffered IO tiles + f32 body temps.
    row_bytes = (2 * (in_p * x_bytes + in_p * o_bytes + 2 * z_p * 4 + z_p * 4)
                 + 4 * (2 * h_p + 4 * z_p + 2 * in_p))

    if bm is None:
        B_p = _round_up(B, align)
        bm = _pick_bm(B_p, align, row_bytes)
    else:
        bm = _round_up(min(bm, _round_up(B, align)), align)
        B_p = _round_up(B, bm)
    grid = (B_p // bm,)

    # --- Inputs: avoid wrapper pad HBM passes when no padding is required. ---
    need_pad = (B_p != B) or (in_p != input_dim)
    if need_pad:
        x_p = jnp.zeros((B_p, in_p), compute_dtype).at[:B, :input_dim].set(
            x.astype(compute_dtype))
    else:
        x_p = x.astype(compute_dtype)
    # eps is tiny (B x z_p f32); zero-padded lanes are harmless because the
    # corresponding sigma lanes are exactly zero.
    eps_p = jnp.zeros((B_p, z_p), jnp.float32).at[:B, :z_dim].set(eps)

    def row_spec(cols):
        return pl.BlockSpec((bm, cols), lambda i: (i, 0))

    def const_spec(shape):
        # Constant block index -> weights stay resident, no per-step re-DMA.
        return pl.BlockSpec(shape, lambda i: (0, 0))

    flops = 2 * B_p * (in_p * h_p + h_p * (2 * z_p) + z_p * h_p + h_p * in_p)
    bytes_accessed = sum(int(a.size) * a.dtype.itemsize for a in
                         (x_p, eps_p, w1, b1, wms, bms, wz, bz, wout, bout))
    bytes_accessed += B_p * (in_p * o_bytes + 2 * z_p * 4)   # outputs

    out_shapes = (
        jax.ShapeDtypeStruct((B_p, in_p), out_dtype),       # x_reconstructed
        jax.ShapeDtypeStruct((B_p, 2 * z_p), jnp.float32),  # fused mu||sigma
    )

    xrec_p, ms_p = pl.pallas_call(
        _vae_kernel,
        out_shape=out_shapes,
        grid=grid,
        in_specs=[
            row_spec(in_p),              # x
            row_spec(z_p),               # eps
            const_spec(w1.shape), const_spec(b1.shape),
            const_spec(wms.shape), const_spec(bms.shape),
            const_spec(wz.shape), const_spec(bz.shape),
            const_spec(wout.shape), const_spec(bout.shape),
        ],
        out_specs=(row_spec(in_p), row_spec(2 * z_p)),
        compiler_params=pltpu.CompilerParams(
            dimension_semantics=("parallel",),
            vmem_limit_bytes=_VMEM_LIMIT),
        cost_estimate=pl.CostEstimate(
            flops=flops,
            transcendentals=B_p * in_p,
            bytes_accessed=bytes_accessed),
    )(x_p, eps_p, w1, b1, wms, bms, wz, bz, wout, bout)

    # Split the fused mu||sigma stream at the 128-lane boundary (tiny slices).
    mu = ms_p[:B, :z_dim]
    sigma = ms_p[:B, z_p:z_p + z_dim]
    xrec = xrec_p[:B, :input_dim] if need_pad else xrec_p
    return xrec, mu, sigma


def init_params(key, input_dim, h_dim=200, z_dim=20):
    """Deterministic synthetic parameters (PyTorch nn.Linear-like uniform init).

    Weights stored transposed vs PyTorch: (in_features, out_features)."""
    def linear(k, fan_in, fan_out):
        k_w, k_b = jax.random.split(k)
        bound = 1.0 / jnp.sqrt(fan_in)
        w = jax.random.uniform(k_w, (fan_in, fan_out), jnp.float32, -bound, bound)
        b = jax.random.uniform(k_b, (fan_out,), jnp.float32, -bound, bound)
        return w, b

    keys = jax.random.split(key, 5)
    w1, b1 = linear(keys[0], input_dim, h_dim)       # img_2hid
    wmu, bmu = linear(keys[1], h_dim, z_dim)         # hid_2mu
    wsig, bsig = linear(keys[2], h_dim, z_dim)       # hid_2sigma
    wz, bz = linear(keys[3], z_dim, h_dim)           # z_2hid
    wout, bout = linear(keys[4], h_dim, input_dim)   # hid_img
    return {
        "w_img2hid": w1, "b_img2hid": b1,
        "w_mu": wmu, "b_mu": bmu,
        "w_sigma": wsig, "b_sigma": bsig,
        "w_z2hid": wz, "b_z2hid": bz,
        "w_hid2img": wout, "b_hid2img": bout,
    }


def vae_ref(x, eps, p):
    """Pure-JAX reference (mirrors the PyTorch module)."""
    h = jnp.maximum(x @ p["w_img2hid"] + p["b_img2hid"], 0.0)
    mu = h @ p["w_mu"] + p["b_mu"]
    sigma = h @ p["w_sigma"] + p["b_sigma"]
    z = mu + sigma * eps
    h2 = jnp.maximum(z @ p["w_z2hid"] + p["b_z2hid"], 0.0)
    xrec = jax.nn.sigmoid(h2 @ p["w_hid2img"] + p["b_hid2img"])
    return xrec, mu, sigma


if __name__ == "__main__":
    # Small shapes consistent with the module (flattened image input; module
    # defaults h_dim=200, z_dim=20). INPUT_DIM=128 exercises the zero-copy
    # (no wrapper pad/slice) lane-dense path; a second config exercises the
    # padded fallback path.
    B = 256
    INPUT_DIM = 128
    H_DIM = 200
    Z_DIM = 20

    key = jax.random.PRNGKey(0)
    k_x, k_eps, k_params, k_x2, k_eps2, k_params2 = jax.random.split(key, 6)

    x = jax.random.uniform(k_x, (B, INPUT_DIM), jnp.float32)   # "pixels" in [0,1)
    eps = jax.random.uniform(k_eps, (B, Z_DIM), jnp.float32)   # torch.rand_like -> U[0,1)
    params = init_params(k_params, INPUT_DIM, H_DIM, Z_DIM)

    # Pure-JAX reference.
    x_rec_r, mu_r, sigma_r = vae_ref(x, eps, params)

    # f32 path (tight tolerance; sigmoid uses approx reciprocal on EUP).
    x_rec, mu, sigma = jax.block_until_ready(
        vae_forward(x, eps, params, compute_dtype=jnp.float32))
    assert jnp.allclose(x_rec, x_rec_r, atol=2e-3, rtol=2e-3)
    assert jnp.allclose(mu, mu_r, atol=2e-3, rtol=2e-3)
    assert jnp.allclose(sigma, sigma_r, atol=2e-3, rtol=2e-3)

    # bf16 MXU path (valid on v5e as well as v6e/v7x): bf16 weights + x for the
    # MXU, f32 accumulation, f32 elementwise. Note x itself is quantized to
    # bf16 before the first matmul (fine for [0,1) pixel data).
    x_rec_b, mu_b, sigma_b = jax.block_until_ready(
        vae_forward(x, eps, params, compute_dtype=jnp.bfloat16))
    assert jnp.allclose(x_rec_b, x_rec_r, atol=6e-2, rtol=6e-2)
    assert jnp.allclose(mu_b, mu_r, atol=6e-2, rtol=6e-2)
    assert jnp.allclose(sigma_b, sigma_r, atol=6e-2, rtol=6e-2)

    # Padded fallback path: non-128 input_dim and non-aligned batch.
    B2, IN2 = 60, 100
    x2 = jax.random.uniform(k_x2, (B2, IN2), jnp.float32)
    eps2 = jax.random.uniform(k_eps2, (B2, Z_DIM), jnp.float32)
    params2 = init_params(k_params2, IN2, H_DIM, Z_DIM)
    x_rec2_r, mu2_r, sigma2_r = vae_ref(x2, eps2, params2)
    x_rec2, mu2, sigma2 = jax.block_until_ready(
        vae_forward(x2, eps2, params2, compute_dtype=jnp.float32))
    assert x_rec2.shape == (B2, IN2)
    assert jnp.allclose(x_rec2, x_rec2_r, atol=2e-3, rtol=2e-3)
    assert jnp.allclose(mu2, mu2_r, atol=2e-3, rtol=2e-3)
    assert jnp.allclose(sigma2, sigma2_r, atol=2e-3, rtol=2e-3)

    print("KERNEL_OK")
</pallas_src>

<mosaic_0001>
module attributes {stable_mosaic.version = 11 : i64} {
  func.func @_vae_kernel(%arg0: i32, %arg1: memref<256x128xf32, #tpu.memory_space<vmem>>, %arg2: memref<256x128xf32, #tpu.memory_space<vmem>>, %arg3: memref<128x256xf32, #tpu.memory_space<vmem>>, %arg4: memref<1x256xf32, #tpu.memory_space<vmem>>, %arg5: memref<256x256xf32, #tpu.memory_space<vmem>>, %arg6: memref<1x256xf32, #tpu.memory_space<vmem>>, %arg7: memref<128x256xf32, #tpu.memory_space<vmem>>, %arg8: memref<1x256xf32, #tpu.memory_space<vmem>>, %arg9: memref<256x128xf32, #tpu.memory_space<vmem>>, %arg10: memref<1x128xf32, #tpu.memory_space<vmem>>, %arg11: memref<256x128xf32, #tpu.memory_space<vmem>>, %arg12: memref<256x256xf32, #tpu.memory_space<vmem>>) attributes {dimension_semantics = [#tpu.dimension_semantics<parallel>], iteration_bounds = array<i64: 1>, scalar_prefetch = 0 : i64, scratch_operands = 0 : i64, tpu.core_type = #tpu.core_type<tc>, window_params = [{transform_indices = @transform_0, window_bounds = array<i64: 256, 128>}, {transform_indices = @transform_1, window_bounds = array<i64: 256, 128>}, {pipeline_mode = #tpu.pipeline_mode<synchronous>, transform_indices = @transform_2, window_bounds = array<i64: 128, 256>}, {pipeline_mode = #tpu.pipeline_mode<synchronous>, transform_indices = @transform_3, window_bounds = array<i64: 1, 256>}, {pipeline_mode = #tpu.pipeline_mode<synchronous>, transform_indices = @transform_4, window_bounds = array<i64: 256, 256>}, {pipeline_mode = #tpu.pipeline_mode<synchronous>, transform_indices = @transform_5, window_bounds = array<i64: 1, 256>}, {pipeline_mode = #tpu.pipeline_mode<synchronous>, transform_indices = @transform_6, window_bounds = array<i64: 128, 256>}, {pipeline_mode = #tpu.pipeline_mode<synchronous>, transform_indices = @transform_7, window_bounds = array<i64: 1, 256>}, {pipeline_mode = #tpu.pipeline_mode<synchronous>, transform_indices = @transform_8, window_bounds = array<i64: 256, 128>}, {pipeline_mode = #tpu.pipeline_mode<synchronous>, transform_indices = @transform_9, window_bounds = array<i64: 1, 128>}, {transform_indices = @transform_10, window_bounds = array<i64: 256, 128>}, {transform_indices = @transform_11, window_bounds = array<i64: 256, 256>}]} {
    %c0 = arith.constant 0 : index
    %c0_0 = arith.constant 0 : index
    %0 = vector.load %arg1[%c0, %c0_0] : memref<256x128xf32, #tpu.memory_space<vmem>>, vector<256x128xf32>
    %c0_1 = arith.constant 0 : index
    %c0_2 = arith.constant 0 : index
    %1 = vector.load %arg3[%c0_1, %c0_2] : memref<128x256xf32, #tpu.memory_space<vmem>>, vector<128x256xf32>
    %cst = arith.constant dense<0.000000e+00> : vector<256x256xf32>
    %2 = tpu.matmul %0, %1, %cst {dimension_numbers = #tpu.dot_dimension_numbers<[1], [0], [0], [1], [0, 0, 1, 1], [], []>} : vector<256x128xf32>, vector<128x256xf32>, vector<256x256xf32> -> vector<256x256xf32>
    %c0_3 = arith.constant 0 : index
    %c0_4 = arith.constant 0 : index
    %3 = vector.load %arg4[%c0_3, %c0_4] : memref<1x256xf32, #tpu.memory_space<vmem>>, vector<1x256xf32>
    %4 = vector.broadcast %3 : vector<1x256xf32> to vector<256x256xf32>
    %5 = arith.addf %2, %4 : vector<256x256xf32>
    %cst_5 = arith.constant 0.000000e+00 : f32
    %6 = vector.broadcast %cst_5 : f32 to vector<256x256xf32>
    %7 = arith.maximumf %5, %6 : vector<256x256xf32>
    %c0_6 = arith.constant 0 : index
    %c0_7 = arith.constant 0 : index
    %8 = vector.load %arg5[%c0_6, %c0_7] : memref<256x256xf32, #tpu.memory_space<vmem>>, vector<256x256xf32>
    %cst_8 = arith.constant dense<0.000000e+00> : vector<256x256xf32>
    %9 = tpu.matmul %7, %8, %cst_8 {dimension_numbers = #tpu.dot_dimension_numbers<[1], [0], [0], [1], [0, 0, 1, 1], [], []>} : vector<256x256xf32>, vector<256x256xf32>, vector<256x256xf32> -> vector<256x256xf32>
    %c0_9 = arith.constant 0 : index
    %c0_10 = arith.constant 0 : index
    %10 = vector.load %arg6[%c0_9, %c0_10] : memref<1x256xf32, #tpu.memory_space<vmem>>, vector<1x256xf32>
    %11 = vector.broadcast %10 : vector<1x256xf32> to vector<256x256xf32>
    %12 = arith.addf %9, %11 : vector<256x256xf32>
    %13 = vector.extract_strided_slice %12 {offsets = [0, 0], sizes = [256, 128], strides = [1, 1]} : vector<256x256xf32> to vector<256x128xf32>
    %14 = vector.extract_strided_slice %12 {offsets = [0, 128], sizes = [256, 128], strides = [1, 1]} : vector<256x256xf32> to vector<256x128xf32>
    %c0_11 = arith.constant 0 : index
    %c0_12 = arith.constant 0 : index
    %15 = vector.load %arg2[%c0_11, %c0_12] : memref<256x128xf32, #tpu.memory_space<vmem>>, vector<256x128xf32>
    %16 = arith.mulf %14, %15 : vector<256x128xf32>
    %17 = arith.addf %13, %16 : vector<256x128xf32>
    %c0_13 = arith.constant 0 : index
    %c0_14 = arith.constant 0 : index
    %18 = vector.load %arg7[%c0_13, %c0_14] : memref<128x256xf32, #tpu.memory_space<vmem>>, vector<128x256xf32>
    %cst_15 = arith.constant dense<0.000000e+00> : vector<256x256xf32>
    %19 = tpu.matmul %17, %18, %cst_15 {dimension_numbers = #tpu.dot_dimension_numbers<[1], [0], [0], [1], [0, 0, 1, 1], [], []>} : vector<256x128xf32>, vector<128x256xf32>, vector<256x256xf32> -> vector<256x256xf32>
    %c0_16 = arith.constant 0 : index
    %c0_17 = arith.constant 0 : index
    %20 = vector.load %arg8[%c0_16, %c0_17] : memref<1x256xf32, #tpu.memory_space<vmem>>, vector<1x256xf32>
    %21 = vector.broadcast %20 : vector<1x256xf32> to vector<256x256xf32>
    %22 = arith.addf %19, %21 : vector<256x256xf32>
    %cst_18 = arith.constant 0.000000e+00 : f32
    %23 = vector.broadcast %cst_18 : f32 to vector<256x256xf32>
    %24 = arith.maximumf %22, %23 : vector<256x256xf32>
    %c0_19 = arith.constant 0 : index
    %c0_20 = arith.constant 0 : index
    %25 = vector.load %arg9[%c0_19, %c0_20] : memref<256x128xf32, #tpu.memory_space<vmem>>, vector<256x128xf32>
    %cst_21 = arith.constant dense<0.000000e+00> : vector<256x128xf32>
    %26 = tpu.matmul %24, %25, %cst_21 {dimension_numbers = #tpu.dot_dimension_numbers<[1], [0], [0], [1], [0, 0, 1, 1], [], []>} : vector<256x256xf32>, vector<256x128xf32>, vector<256x128xf32> -> vector<256x128xf32>
    %c0_22 = arith.constant 0 : index
    %c0_23 = arith.constant 0 : index
    %27 = vector.load %arg10[%c0_22, %c0_23] : memref<1x128xf32, #tpu.memory_space<vmem>>, vector<1x128xf32>
    %28 = vector.broadcast %27 : vector<1x128xf32> to vector<256x128xf32>
    %29 = arith.addf %26, %28 : vector<256x128xf32>
    %cst_24 = arith.constant 0.000000e+00 : f32
    %30 = vector.broadcast %cst_24 : f32 to vector<256x128xf32>
    %31 = arith.subf %30, %29 : vector<256x128xf32>
    %32 = math.exp %31 : vector<256x128xf32>
    %cst_25 = arith.constant 1.000000e+00 : f32
    %33 = vector.broadcast %cst_25 : f32 to vector<256x128xf32>
    %34 = arith.addf %33, %32 : vector<256x128xf32>
    %35 = tpu.reciprocal %34 {approx = true} : vector<256x128xf32> -> vector<256x128xf32>
    %c0_26 = arith.constant 0 : index
    %c0_27 = arith.constant 0 : index
    %36 = vector.load %arg11[%c0_26, %c0_27] : memref<256x128xf32, #tpu.memory_space<vmem>>, vector<256x128xf32>
    tpu.vector_store %arg11[%c0_26, %c0_27], %35 {strides = array<i32>} : memref<256x128xf32, #tpu.memory_space<vmem>>, vector<256x128xf32>,
    %c0_28 = arith.constant 0 : index
    %c0_29 = arith.constant 0 : index
    %37 = vector.load %arg12[%c0_28, %c0_29] : memref<256x256xf32, #tpu.memory_space<vmem>>, vector<256x256xf32>
    tpu.vector_store %arg12[%c0_28, %c0_29], %12 {strides = array<i32>} : memref<256x256xf32, #tpu.memory_space<vmem>>, vector<256x256xf32>,
    return
  }
  func.func @transform_0(%arg0: i32) -> (i32, i32) {
    %c0_i32 = arith.constant 0 : i32
    %c0_i32_0 = arith.constant 0 : i32
    return %arg0, %c0_i32 : i32, i32
  }
  func.func @transform_1(%arg0: i32) -> (i32, i32) {
    %c0_i32 = arith.constant 0 : i32
    %c0_i32_0 = arith.constant 0 : i32
    return %arg0, %c0_i32 : i32, i32
  }
  func.func @transform_2(%arg0: i32) -> (i32, i32) {
    %c0_i32 = arith.constant 0 : i32
    %c0_i32_0 = arith.constant 0 : i32
    %c0_i32_1 = arith.constant 0 : i32
    return %c0_i32, %c0_i32_0 : i32, i32
  }
  func.func @transform_3(%arg0: i32) -> (i32, i32) {
    %c0_i32 = arith.constant 0 : i32
    %c0_i32_0 = arith.constant 0 : i32
    %c0_i32_1 = arith.constant 0 : i32
    return %c0_i32, %c0_i32_0 : i32, i32
  }
  func.func @transform_4(%arg0: i32) -> (i32, i32) {
    %c0_i32 = arith.constant 0 : i32
    %c0_i32_0 = arith.constant 0 : i32
    %c0_i32_1 = arith.constant 0 : i32
    return %c0_i32, %c0_i32_0 : i32, i32
  }
  func.func @transform_5(%arg0: i32) -> (i32, i32) {
    %c0_i32 = arith.constant 0 : i32
    %c0_i32_0 = arith.constant 0 : i32
    %c0_i32_1 = arith.constant 0 : i32
    return %c0_i32, %c0_i32_0 : i32, i32
  }
  func.func @transform_6(%arg0: i32) -> (i32, i32) {
    %c0_i32 = arith.constant 0 : i32
    %c0_i32_0 = arith.constant 0 : i32
    %c0_i32_1 = arith.constant 0 : i32
    return %c0_i32, %c0_i32_0 : i32, i32
  }
  func.func @transform_7(%arg0: i32) -> (i32, i32) {
    %c0_i32 = arith.constant 0 : i32
    %c0_i32_0 = arith.constant 0 : i32
    %c0_i32_1 = arith.constant 0 : i32
    return %c0_i32, %c0_i32_0 : i32, i32
  }
  func.func @transform_8(%arg0: i32) -> (i32, i32) {
    %c0_i32 = arith.constant 0 : i32
    %c0_i32_0 = arith.constant 0 : i32
    %c0_i32_1 = arith.constant 0 : i32
    return %c0_i32, %c0_i32_0 : i32, i32
  }
  func.func @transform_9(%arg0: i32) -> (i32, i32) {
    %c0_i32 = arith.constant 0 : i32
    %c0_i32_0 = arith.constant 0 : i32
    %c0_i32_1 = arith.constant 0 : i32
    return %c0_i32, %c0_i32_0 : i32, i32
  }
  func.func @transform_10(%arg0: i32) -> (i32, i32) {
    %c0_i32 = arith.constant 0 : i32
    %c0_i32_0 = arith.constant 0 : i32
    return %arg0, %c0_i32 : i32, i32
  }
  func.func @transform_11(%arg0: i32) -> (i32, i32) {
    %c0_i32 = arith.constant 0 : i32
    %c0_i32_0 = arith.constant 0 : i32
    return %arg0, %c0_i32 : i32, i32
  }
}

</mosaic_0001>

<bundles_post_ra>
// kernel: vae_forward.1
= control target key start
LH: loop header
LB: loop body
LE: loop exit
PB: predicated region body
PF: predicated region fallthrough
CT: control target
= control target key end

     0   :  { %v1988_v4 = vmov 0.0   ;;  %s3379_s0 = inlined_call_operand.vmem [shape: f32[256,128], index: 0, kind: input, shape index: {}]   ;;  %s3380_s1 = inlined_call_operand.vmem [shape: f32[256,128], index: 1, kind: input, shape index: {}]   ;;  %s3381_s2 = inlined_call_operand.vmem [shape: f32[128,256], index: 2, kind: input, shape index: {}]   ;;  %s3382_s3 = inlined_call_operand.vmem [shape: f32[1,256], index: 3, kind: input, shape index: {}]   ;;  %s3383_s4 = inlined_call_operand.vmem [shape: f32[256,256], index: 4, kind: input, shape index: {}]   ;;  %s3384_s5 = inlined_call_operand.vmem [shape: f32[1,256], index: 5, kind: input, shape index: {}]   ;;  %s3385_s6 = inlined_call_operand.vmem [shape: f32[128,256], index: 6, kind: input, shape index: {}]   ;;  %s3386_s7 = inlined_call_operand.vmem [shape: f32[1,256], index: 7, kind: input, shape index: {}]   ;;  %s3387_s8 = inlined_call_operand.vmem [shape: f32[256,128], index: 8, kind: input, shape index: {}]   ;;  %s3388_s9 = inlined_call_operand.vmem [shape: f32[1,128], index: 9, kind: input, shape index: {}]   ;;  %s3389_s10 = inlined_call_operand.hbm [shape: f32[256,128], index: 10, kind: output, shape index: {0}]   ;;  %s3390_s11 = inlined_call_operand.vmem [shape: f32[256,256], index: 11, kind: output, shape index: {1}]  }
   0x1   :  { %v101_v0 = vld [vmem:[%s3381_s2 + $0xf8] sm:$0xff]  ;;  %v100_v1 = vld [vmem:[%s3381_s2 + $0xf0] sm:$0xff]  ;;  %v99_v2 = vld [vmem:[%s3381_s2 + $0xe8] sm:$0xff]  ;;  %178 = vmatprep.mubr.f32.mxu0 %v1988_v4 }
   0x2   :  { %114 = vmatprep.subr.mxu0 %v101_v0  ;;  %v98_v3 = vld [vmem:[%s3381_s2 + $0xe0] sm:$0xff]  ;;  %v97_v5 = vld [vmem:[%s3381_s2 + $0xd8] sm:$0xff]  ;;  %v96_v6 = vld [vmem:[%s3381_s2 + $0xd0] sm:$0xff] }
   0x3   :  { %115 = vmatpush1.msra.mxu0 %v100_v1  ;;  %v95_v7 = vld [vmem:[%s3381_s2 + $0xc8] sm:$0xff]  ;;  %v94_v8 = vld [vmem:[%s3381_s2 + $0xc0] sm:$0xff]  ;;  %v93_v9 = vld [vmem:[%s3381_s2 + $0xb8] sm:$0xff] }
   0x4   :  { %116 = vmatprep.subr.mxu0 %v99_v2  ;;  %v92_v10 = vld [vmem:[%s3381_s2 + $0xb0] sm:$0xff]  ;;  %v91_v11 = vld [vmem:[%s3381_s2 + $0xa8] sm:$0xff]  ;;  %v90_v12 = vld [vmem:[%s3381_s2 + $0xa0] sm:$0xff] }
   0x5   :  { %117 = vmatpush1.msra.mxu0 %v98_v3  ;;  %v89_v13 = vld [vmem:[%s3381_s2 + $0x98] sm:$0xff]  ;;  %v88_v14 = vld [vmem:[%s3381_s2 + $0x90] sm:$0xff]  ;;  %v87_v15 = vld [vmem:[%s3381_s2 + $0x88] sm:$0xff] }
   0x6   :  { %118 = vmatprep.subr.mxu0 %v97_v5  ;;  %v86_v16 = vld [vmem:[%s3381_s2 + $0x80] sm:$0xff]  ;;  %v85_v17 = vld [vmem:[%s3381_s2 + $0x78] sm:$0xff]  ;;  %v84_v18 = vld [vmem:[%s3381_s2 + $0x70] sm:$0xff] }
   0x7   :  { %119 = vmatpush1.msra.mxu0 %v96_v6  ;;  %v83_v19 = vld [vmem:[%s3381_s2 + $0x68] sm:$0xff]  ;;  %v82_v20 = vld [vmem:[%s3381_s2 + $0x60] sm:$0xff]  ;;  %v81_v21 = vld [vmem:[%s3381_s2 + $0x58] sm:$0xff] }
   0x8   :  { %120 = vmatprep.subr.mxu0 %v95_v7  ;;  %v80_v22 = vld [vmem:[%s3381_s2 + $0x50] sm:$0xff]  ;;  %v79_v23 = vld [vmem:[%s3381_s2 + $0x48] sm:$0xff] }
   0x9   :  { %121 = vmatpush1.msra.mxu0 %v94_v8 }
   0xa   :  { %122 = vmatprep.subr.mxu0 %v93_v9 }
   0xb   :  { %123 = vmatpush1.msra.mxu0 %v92_v10 }
   0xc   :  { %124 = vmatprep.subr.mxu0 %v91_v11 }
   0xd   :  { %125 = vmatpush1.msra.mxu0 %v90_v12 }
   0xe   :  { %126 = vmatprep.subr.mxu0 %v89_v13 }
   0xf   :  { %127 = vmatpush1.msra.mxu0 %v88_v14 }
  0x10   :  { %128 = vmatprep.subr.mxu0 %v87_v15 }
  0x11   :  { %129 = vmatpush1.msra.mxu0 %v86_v16 }
  0x12   :  { %130 = vmatprep.subr.mxu0 %v85_v17 }
  0x13   :  { %131 = vmatpush1.msra.mxu0 %v84_v18 }
  0x14   :  { %132 = vmatprep.subr.mxu0 %v83_v19 }
  0x15   :  { %133 = vmatpush1.msra.mxu0 %v82_v20 }
  0x16   :  { %17 = vsyncpa [#allocation3], 0  ;;  %134 = vmatprep.subr.mxu0 %v81_v21  ;;  %v78_v24 = vld [vmem:[%s3381_s2 + $0x40] sm:$0xff]  ;;  %v77_v25 = vld [vmem:[%s3381_s2 + $0x38] sm:$0xff] }
  0x17   :  { %135 = vmatpush1.msra.mxu0 %v80_v22  ;;  %v76_v26 = vld [vmem:[%s3381_s2 + $0x30] sm:$0xff]  ;;  %v75_v27 = vld [vmem:[%s3381_s2 + $0x28] sm:$0xff]  ;;  %v74_v28 = vld [vmem:[%s3381_s2 + $0x20] sm:$0xff] }
  0x18   :  { %136 = vmatprep.subr.mxu0 %v79_v23  ;;  %v73_v29 = vld [vmem:[%s3381_s2 + $0x18] sm:$0xff]  ;;  %v72_v30 = vld [vmem:[%s3381_s2 + $0x10] sm:$0xff]  ;;  %v71_v31 = vld [vmem:[%s3381_s2 + $0x8] sm:$0xff] }
  0x19   :  { %137 = vmatpush1.msra.mxu0 %v78_v24  ;;  %v70_v32 = vld [vmem:[%s3381_s2] sm:$0xff]  ;;  %v466_v33 = vld [vmem:[%s3383_s4 + $0xf8] sm:$0xff]  ;;  %v465_v34 = vld [vmem:[%s3383_s4 + $0xf0] sm:$0xff] }
  0x1a   :  { %138 = vmatprep.subr.mxu0 %v77_v25  ;;  %v464_v35 = vld [vmem:[%s3383_s4 + $0xe8] sm:$0xff]  ;;  %v38_v36 = vld [vmem:[%s3379_s0] sm:$0xff]  ;;  %511 = vmatprep.subr.mxu1 %v466_v33  ;;  %v462_v38 = vld [vmem:[%s3383_s4 + $0xd8] sm:$0xff] }
  0x1b   :  { %139 = vmatpush1.msra.mxu0 %v76_v26  ;;  %v463_v37 = vld [vmem:[%s3383_s4 + $0xe0] sm:$0xff]  ;;  %512 = vmatpush1.msra.mxu1 %v465_v34  ;;  %v461_v39 = vld [vmem:[%s3383_s4 + $0xd0] sm:$0xff]  ;;  %v460_v40 = vld [vmem:[%s3383_s4 + $0xc8] sm:$0xff] }
  0x1c   :  { %140 = vmatprep.subr.mxu0 %v75_v27  ;;  %513 = vmatprep.subr.mxu1 %v464_v35  ;;  %v39_v41 = vld [vmem:[%s3379_s0 + $0x8] sm:$0xff]  ;;  %v459_v42 = vld [vmem:[%s3383_s4 + $0xc0] sm:$0xff]  ;;  %v458_v43 = vld [vmem:[%s3383_s4 + $0xb8] sm:$0xff] }
  0x1d   :  { %141 = vmatpush1.msra.mxu0 %v74_v28  ;;  %514 = vmatpush1.msra.mxu1 %v463_v37  ;;  %v457_v44 = vld [vmem:[%s3383_s4 + $0xb0] sm:$0xff]  ;;  %v456_v45 = vld [vmem:[%s3383_s4 + $0xa8] sm:$0xff]  ;;  %v455_v47 = vld [vmem:[%s3383_s4 + $0xa0] sm:$0xff] }
  0x1e   :  { %142 = vmatprep.subr.mxu0 %v73_v29  ;;  %515 = vmatprep.subr.mxu1 %v462_v38  ;;  %v40_v46 = vld [vmem:[%s3379_s0 + $0x10] sm:$0xff]  ;;  %v454_v48 = vld [vmem:[%s3383_s4 + $0x98] sm:$0xff]  ;;  %v452_v50 = vld [vmem:[%s3383_s4 + $0x88] sm:$0xff] }
  0x1f   :  { %143 = vmatpush1.msra.mxu0 %v72_v30  ;;  %516 = vmatpush1.msra.mxu1 %v461_v39  ;;  %v453_v49 = vld [vmem:[%s3383_s4 + $0x90] sm:$0xff]  ;;  %v41_v51 = vld [vmem:[%s3379_s0 + $0x18] sm:$0xff]  ;;  %v451_v52 = vld [vmem:[%s3383_s4 + $0x80] sm:$0xff] }
  0x20   :  { %144 = vmatprep.subr.mxu0 %v71_v31  ;;  %517 = vmatprep.subr.mxu1 %v460_v40  ;;  %v450_v53 = vld [vmem:[%s3383_s4 + $0x78] sm:$0xff]  ;;  %v449_v54 = vld [vmem:[%s3383_s4 + $0x70] sm:$0xff]  ;;  %v448_v55 = vld [vmem:[%s3383_s4 + $0x68] sm:$0xff] }
  0x21   :  { %145 = vmatpush1.msra.mxu0 %v70_v32  ;;  %518 = vmatpush1.msra.mxu1 %v459_v42  ;;  %v42_v56 = vld [vmem:[%s3379_s0 + $0x20] sm:$0xff]  ;;  %v446_v58 = vld [vmem:[%s3383_s4 + $0x58] sm:$0xff]  ;;  %v445_v59 = vld [vmem:[%s3383_s4 + $0x50] sm:$0xff] }
  0x22   :  { %179 = vmatmul.mubr.f32.vlgmr.msra.gmra.mxu0 %v38_v36  ;;  %519 = vmatprep.subr.mxu1 %v458_v43  ;;  %v447_v57 = vld [vmem:[%s3383_s4 + $0x60] sm:$0xff]  ;;  %v444_v60 = vld [vmem:[%s3383_s4 + $0x48] sm:$0xff]  ;;  %v442_v63 = vld [vmem:[%s3383_s4 + $0x38] sm:$0xff] }
  0x23   :  { %184 = vmatprep.mubr.f32.mxu0 %v1988_v4  ;;  %520 = vmatpush1.msra.mxu1 %v457_v44  ;;  %v43_v61 = vld [vmem:[%s3379_s0 + $0x28] sm:$0xff]  ;;  %v443_v62 = vld [vmem:[%s3383_s4 + $0x40] sm:$0xff]  ;;  %v441_v0 = vld [vmem:[%s3383_s4 + $0x30] sm:$0xff] }
  0x24   :  { %521 = vmatprep.subr.mxu1 %v456_v45  ;;  %v440_v1 = vld [vmem:[%s3383_s4 + $0x28] sm:$0xff]  ;;  %v44_v2 = vld [vmem:[%s3379_s0 + $0x30] sm:$0xff]  ;;  %v439_v3 = vld [vmem:[%s3383_s4 + $0x20] sm:$0xff] }
  0x25   :  { %522 = vmatpush1.msra.mxu1 %v455_v47  ;;  %v438_v5 = vld [vmem:[%s3383_s4 + $0x18] sm:$0xff]  ;;  %v437_v6 = vld [vmem:[%s3383_s4 + $0x10] sm:$0xff]  ;;  %v436_v7 = vld [vmem:[%s3383_s4 + $0x8] sm:$0xff] }
  0x26   :  { %185 = vmatmul.mubr.f32.gmra.mxu0 %v39_v41  ;;  %523 = vmatprep.subr.mxu1 %v454_v48  ;;  %v45_v8 = vld [vmem:[%s3379_s0 + $0x38] sm:$0xff]  ;;  %v435_v9 = vld [vmem:[%s3383_s4] sm:$0xff]  ;;  %v497_v11 = vld [vmem:[%s3383_s4 + $0x1f0] sm:$0xff] }
  0x27   :  { %190 = vmatprep.mubr.f32.mxu0 %v1988_v4  ;;  %524 = vmatpush1.msra.mxu1 %v453_v49  ;;  %v498_v10 = vld [vmem:[%s3383_s4 + $0x1f8] sm:$0xff]  ;;  %v496_v12 = vld [vmem:[%s3383_s4 + $0x1e8] sm:$0xff]  ;;  %v46_v13 = vld [vmem:[%s3379_s0 + $0x40] sm:$0xff] }
  0x28   :  { %525 = vmatprep.subr.mxu1 %v452_v50  ;;  %v495_v14 = vld [vmem:[%s3383_s4 + $0x1e0] sm:$0xff]  ;;  %v494_v15 = vld [vmem:[%s3383_s4 + $0x1d8] sm:$0xff]  ;;  %v493_v16 = vld [vmem:[%s3383_s4 + $0x1d0] sm:$0xff] }
  0x29   :  { %526 = vmatpush1.msra.mxu1 %v451_v52  ;;  %v492_v17 = vld [vmem:[%s3383_s4 + $0x1c8] sm:$0xff]  ;;  %v491_v19 = vld [vmem:[%s3383_s4 + $0x1c0] sm:$0xff]  ;;  %v490_v20 = vld [vmem:[%s3383_s4 + $0x1b8] sm:$0xff] }
  0x2a   :  { %191 = vmatmul.mubr.f32.gmra.mxu0 %v40_v46  ;;  %527 = vmatprep.subr.mxu1 %v450_v53  ;;  %v47_v18 = vld [vmem:[%s3379_s0 + $0x48] sm:$0xff]  ;;  %v489_v21 = vld [vmem:[%s3383_s4 + $0x1b0] sm:$0xff]  ;;  %v487_v24 = vld [vmem:[%s3383_s4 + $0x1a0] sm:$0xff] }
  0x2b   :  { %196 = vmatprep.mubr.f32.mxu0 %v1988_v4  ;;  %528 = vmatpush1.msra.mxu1 %v449_v54  ;;  %v488_v22 = vld [vmem:[%s3383_s4 + $0x1a8] sm:$0xff]  ;;  %v48_v23 = vld [vmem:[%s3379_s0 + $0x50] sm:$0xff]  ;;  %v486_v25 = vld [vmem:[%s3383_s4 + $0x198] sm:$0xff] }
  0x2c   :  { %529 = vmatprep.subr.mxu1 %v448_v55  ;;  %v485_v26 = vld [vmem:[%s3383_s4 + $0x190] sm:$0xff]  ;;  %v484_v27 = vld [vmem:[%s3383_s4 + $0x188] sm:$0xff]  ;;  %v49_v28 = vld [vmem:[%s3379_s0 + $0x58] sm:$0xff] }
  0x2d   :  { %530 = vmatpush1.msra.mxu1 %v447_v57  ;;  %v483_v29 = vld [vmem:[%s3383_s4 + $0x180] sm:$0xff]  ;;  %v482_v30 = vld [vmem:[%s3383_s4 + $0x178] sm:$0xff]  ;;  %v481_v31 = vld [vmem:[%s3383_s4 + $0x170] sm:$0xff] }
  0x2e   :  { %197 = vmatmul.mubr.f32.gmra.mxu0 %v41_v51  ;;  %531 = vmatprep.subr.mxu1 %v446_v58  ;;  %v480_v32 = vld [vmem:[%s3383_s4 + $0x168] sm:$0xff]  ;;  %v50_v33 = vld [vmem:[%s3379_s0 + $0x60] sm:$0xff]  ;;  %v478_v35 = vld [vmem:[%s3383_s4 + $0x158] sm:$0xff] }
  0x2f   :  { %202 = vmatprep.mubr.f32.mxu0 %v1988_v4  ;;  %532 = vmatpush1.msra.mxu1 %v445_v59  ;;  %v479_v34 = vld [vmem:[%s3383_s4 + $0x160] sm:$0xff]  ;;  %v477_v36 = vld [vmem:[%s3383_s4 + $0x150] sm:$0xff]  ;;  %v476_v37 = vld [vmem:[%s3383_s4 + $0x148] sm:$0xff] }
  0x30   :  { %533 = vmatprep.subr.mxu1 %v444_v60  ;;  %v51_v38 = vld [vmem:[%s3379_s0 + $0x68] sm:$0xff]  ;;  %v475_v39 = vld [vmem:[%s3383_s4 + $0x140] sm:$0xff]  ;;  %v52_v40 = vld [vmem:[%s3379_s0 + $0x70] sm:$0xff] }
  0x31   :  { %534 = vmatpush1.msra.mxu1 %v443_v62  ;;  %v53_v41 = vld [vmem:[%s3379_s0 + $0x78] sm:$0xff]  ;;  %v54_v42 = vld [vmem:[%s3379_s0 + $0x80] sm:$0xff]  ;;  %v473_v44 = vld [vmem:[%s3383_s4 + $0x130] sm:$0xff] }
  0x32   :  { %203 = vmatmul.mubr.f32.gmra.mxu0 %v42_v56  ;;  %535 = vmatprep.subr.mxu1 %v442_v63  ;;  %v474_v43 = vld [vmem:[%s3383_s4 + $0x138] sm:$0xff]  ;;  %v55_v45 = vld [vmem:[%s3379_s0 + $0x88] sm:$0xff]  ;;  %v471_v47 = vld [vmem:[%s3383_s4 + $0x120] sm:$0xff] }
  0x33   :  { %208 = vmatprep.mubr.f32.mxu0 %v1988_v4  ;;  %536 = vmatpush1.msra.mxu1 %v441_v0  ;;  %v472_v46 = vld [vmem:[%s3383_s4 + $0x128] sm:$0xff]  ;;  %v470_v48 = vld [vmem:[%s3383_s4 + $0x118] sm:$0xff]  ;;  %v469_v49 = vld [vmem:[%s3383_s4 + $0x110] sm:$0xff] }
  0x34   :  { %537 = vmatprep.subr.mxu1 %v440_v1  ;;  %v56_v50 = vld [vmem:[%s3379_s0 + $0x90] sm:$0xff]  ;;  %v468_v51 = vld [vmem:[%s3383_s4 + $0x108] sm:$0xff]  ;;  %v467_v52 = vld [vmem:[%s3383_s4 + $0x100] sm:$0xff] }
  0x35   :  { %538 = vmatpush1.msra.mxu1 %v439_v3  ;;  %v57_v53 = vld [vmem:[%s3379_s0 + $0x98] sm:$0xff]  ;;  %v58_v54 = vld [vmem:[%s3379_s0 + $0xa0] sm:$0xff]  ;;  %v59_v55 = vld [vmem:[%s3379_s0 + $0xa8] sm:$0xff] }
  0x36   :  { %209 = vmatmul.mubr.f32.gmra.mxu0 %v43_v61  ;;  %539 = vmatprep.subr.mxu1 %v438_v5  ;;  %v60_v56 = vld [vmem:[%s3379_s0 + $0xb0] sm:$0xff]  ;;  %v61_v57 = vld [vmem:[%s3379_s0 + $0xb8] sm:$0xff]  ;;  %v62_v58 = vld [vmem:[%s3379_s0 + $0xc0] sm:$0xff] }
  0x37   :  { %214 = vmatprep.mubr.f32.mxu0 %v1988_v4  ;;  %540 = vmatpush1.msra.mxu1 %v437_v6  ;;  %v63_v59 = vld [vmem:[%s3379_s0 + $0xc8] sm:$0xff]  ;;  %v64_v60 = vld [vmem:[%s3379_s0 + $0xd0] sm:$0xff]  ;;  %v65_v61 = vld [vmem:[%s3379_s0 + $0xd8] sm:$0xff] }
  0x38   :  { %541 = vmatprep.subr.mxu1 %v436_v7  ;;  %v66_v62 = vld [vmem:[%s3379_s0 + $0xe0] sm:$0xff]  ;;  %v67_v63 = vld [vmem:[%s3379_s0 + $0xe8] sm:$0xff]  ;;  %v68_v0 = vld [vmem:[%s3379_s0 + $0xf0] sm:$0xff] }
  0x39   :  { %542 = vmatpush1.msra.mxu1 %v435_v9  ;;  %v69_v1 = vld [vmem:[%s3379_s0 + $0xf8] sm:$0xff]  ;;  %v894_v3 = vld [vmem:[%s3385_s6 + $0xf0] sm:$0xff]  ;;  %v893_v5 = vld [vmem:[%s3385_s6 + $0xe8] sm:$0xff] }
  0x3a   :  { %215 = vmatmul.mubr.f32.gmra.mxu0 %v44_v2  ;;  %543 = vmatprep.subr.mxu1 %v498_v10  ;;  %v895_v2 = vld [vmem:[%s3385_s6 + $0xf8] sm:$0xff]  ;;  %v892_v6 = vld [vmem:[%s3385_s6 + $0xe0] sm:$0xff]  ;;  %v889_v9 = vld [vmem:[%s3385_s6 + $0xc8] sm:$0xff] }
  0x3b   :  { %220 = vmatprep.mubr.f32.mxu0 %v1988_v4  ;;  %544 = vmatpush2.msra.mxu1 %v497_v11  ;;  %v891_v7 = vld [vmem:[%s3385_s6 + $0xd8] sm:$0xff]  ;;  %v888_v10 = vld [vmem:[%s3385_s6 + $0xc0] sm:$0xff]  ;;  %v104_v11 = vlaneseq }
  0x3c   :  { %545 = vmatprep.subr.mxu1 %v496_v12  ;;  %908 = vmatprep.subr.mxu0 %v895_v2  ;;  %v887_v12 = vld [vmem:[%s3385_s6 + $0xb8] sm:$0xff] }
  0x3d   :  { %546 = vmatpush2.msra.mxu1 %v495_v14  ;;  %909 = vmatpush1.msra.mxu0 %v894_v3  ;;  %v105_v14 = vshrl.u32 %v104_v11, 7 }
  0x3e   :  { %221 = vmatmul.mubr.f32.gmra.mxu0 %v45_v8  ;;  %547 = vmatprep.subr.mxu1 %v494_v15  ;;  %v890_v8 = vld [vmem:[%s3385_s6 + $0xd0] sm:$0xff] }
  0x3f   :  { %226 = vmatprep.mubr.f32.mxu0 %v1988_v4  ;;  %548 = vmatpush2.msra.mxu1 %v493_v16  ;;  %v2500_v15 = vsub.s32 0, %v105_v14  ;;  %v102_v16 = vld [vmem:[%s3382_s3] sm:$0x3] }
  0x40   :  { %549 = vmatprep.subr.mxu1 %v492_v17  ;;  %910 = vmatprep.subr.mxu0 %v893_v5  ;;  %v2505_v17 = vsub.s32 1, %v105_v14 }
  0x41   :  { %550 = vmatpush2.msra.mxu1 %v491_v19  ;;  %911 = vmatpush1.msra.mxu0 %v892_v6  ;;  %v884_v19 = vld [vmem:[%s3385_s6 + $0xa0] sm:$0xff] }
  0x42   :  { %227 = vmatmul.mubr.f32.gmra.mxu0 %v46_v13  ;;  %551 = vmatprep.subr.mxu1 %v490_v20  ;;  %v886_v13 = vld [vmem:[%s3385_s6 + $0xb0] sm:$0xff]  ;;  %v2514_v20 = vrot.slane %v102_v16, %v2500_v15 }
  0x43   :  { %232 = vmatprep.mubr.f32.mxu0 %v1988_v4  ;;  %552 = vmatpush2.msra.mxu1 %v489_v21  ;;  %v2517_v21 = vrot.slane %v102_v16, %v2505_v17 }
  0x44   :  { %553 = vmatprep.subr.mxu1 %v488_v22  ;;  %912 = vmatprep.subr.mxu0 %v891_v7 }
  0x45   :  { %554 = vmatpush2.msra.mxu1 %v487_v24  ;;  %913 = vmatpush1.msra.mxu0 %v890_v8  ;;  %v882_v24 = vld [vmem:[%s3385_s6 + $0x90] sm:$0xff] }
  0x46   :  { %233 = vmatmul.mubr.f32.gmra.mxu0 %v47_v18  ;;  %555 = vmatprep.subr.mxu1 %v486_v25  ;;  %v885_v18 = vld [vmem:[%s3385_s6 + $0xa8] sm:$0xff] }
  0x47   :  { %238 = vmatprep.mubr.f32.mxu0 %v1988_v4  ;;  %556 = vmatpush2.msra.mxu1 %v485_v26 }
  0x48   :  { %557 = vmatprep.subr.mxu1 %v484_v27  ;;  %914 = vmatprep.subr.mxu0 %v889_v9 }
  0x49   :  { %558 = vmatpush2.msra.mxu1 %v483_v29  ;;  %915 = vmatpush1.msra.mxu0 %v888_v10  ;;  %v881_v29 = vld [vmem:[%s3385_s6 + $0x88] sm:$0xff] }
  0x4a   :  { %239 = vmatmul.mubr.f32.gmra.mxu0 %v48_v23  ;;  %559 = vmatprep.subr.mxu1 %v482_v30  ;;  %v883_v23 = vld [vmem:[%s3385_s6 + $0x98] sm:$0xff]  ;;  %v880_v30 = vld [vmem:[%s3385_s6 + $0x80] sm:$0xff] }
  0x4b   :  { %244 = vmatprep.mubr.f32.mxu0 %v1988_v4  ;;  %560 = vmatpush2.msra.mxu1 %v481_v31  ;;  %v879_v31 = vld [vmem:[%s3385_s6 + $0x78] sm:$0xff] }
  0x4c   :  { %561 = vmatprep.subr.mxu1 %v480_v32  ;;  %916 = vmatprep.subr.mxu0 %v887_v12 }
  0x4d   :  { %562 = vmatpush2.msra.mxu1 %v479_v34  ;;  %917 = vmatpush1.msra.mxu0 %v886_v13 }
  0x4e   :  { %245 = vmatmul.mubr.f32.gmra.mxu0 %v49_v28  ;;  %563 = vmatprep.subr.mxu1 %v478_v35 }
  0x4f   :  { %250 = vmatprep.mubr.f32.mxu0 %v1988_v4  ;;  %564 = vmatpush2.msra.mxu1 %v477_v36 }
  0x50   :  { %565 = vmatprep.subr.mxu1 %v476_v37  ;;  %918 = vmatprep.subr.mxu0 %v885_v18  ;;  %v877_v37 = vld [vmem:[%s3385_s6 + $0x68] sm:$0xff] }
  0x51   :  { %566 = vmatpush2.msra.mxu1 %v475_v39  ;;  %919 = vmatpush1.msra.mxu0 %v884_v19  ;;  %v876_v39 = vld [vmem:[%s3385_s6 + $0x60] sm:$0xff] }
  0x52   :  { %251 = vmatmul.mubr.f32.gmra.mxu0 %v50_v33  ;;  %567 = vmatprep.subr.mxu1 %v474_v43  ;;  %v878_v33 = vld [vmem:[%s3385_s6 + $0x70] sm:$0xff] }
  0x53   :  { %256 = vmatprep.mubr.f32.mxu0 %v1988_v4  ;;  %568 = vmatpush2.msra.mxu1 %v473_v44  ;;  %v874_v43 = vld [vmem:[%s3385_s6 + $0x50] sm:$0xff] }
  0x54   :  { %569 = vmatprep.subr.mxu1 %v472_v46  ;;  %920 = vmatprep.subr.mxu0 %v883_v23 }
  0x55   :  { %570 = vmatpush2.msra.mxu1 %v471_v47  ;;  %921 = vmatpush1.msra.mxu0 %v882_v24  ;;  %v873_v47 = vld [vmem:[%s3385_s6 + $0x48] sm:$0xff] }
  0x56   :  { %257 = vmatmul.mubr.f32.gmra.mxu0 %v51_v38  ;;  %571 = vmatprep.subr.mxu1 %v470_v48 }
  0x57   :  { %262 = vmatprep.mubr.f32.mxu0 %v1988_v4  ;;  %572 = vmatpush2.msra.mxu1 %v469_v49  ;;  %v872_v49 = vld [vmem:[%s3385_s6 + $0x40] sm:$0xff] }
  0x58   :  { %573 = vmatprep.subr.mxu1 %v468_v51  ;;  %922 = vmatprep.subr.mxu0 %v881_v29  ;;  %v871_v51 = vld [vmem:[%s3385_s6 + $0x38] sm:$0xff] }
  0x59   :  { %574 = vmatpush2.msra.mxu1 %v467_v52  ;;  %923 = vmatpush1.msra.mxu0 %v880_v30 }
  0x5a   :  { %263 = vmatmul.mubr.f32.gmra.mxu0 %v52_v40  ;;  %1770 = vmatprep.subr.mxu1 %v1988_v4 }
  0x5b   :  { %268 = vmatprep.mubr.f32.mxu0 %v1988_v4  ;;  %924 = vmatprep.subr.mxu0 %v879_v31 }
  0x5c   :  { %925 = vmatpush1.msra.mxu0 %v878_v33 }
  0x5d   :  { %926 = vmatprep.subr.mxu0 %v877_v37 }
  0x5e   :  { %269 = vmatmul.mubr.f32.gmra.mxu0 %v53_v41  ;;  %v875_v41 = vld [vmem:[%s3385_s6 + $0x58] sm:$0xff] }
  0x5f   :  { %274 = vmatprep.mubr.f32.mxu0 %v1988_v4  ;;  %927 = vmatpush1.msra.mxu0 %v876_v39 }
  0x60   :  { %928 = vmatprep.subr.mxu0 %v875_v41 }
  0x61   :  { %929 = vmatpush1.msra.mxu0 %v874_v43 }
  0x62   :  { %275 = vmatmul.mubr.f32.gmra.mxu0 %v54_v42  ;;  %930 = vmatprep.subr.mxu0 %v873_v47 }
  0x63   :  { %280 = vmatprep.mubr.f32.mxu0 %v1988_v4  ;;  %931 = vmatpush1.msra.mxu0 %v872_v49 }
  0x64   :  { %932 = vmatprep.subr.mxu0 %v871_v51 }
  0x66   :  { %281 = vmatmul.mubr.f32.gmra.mxu0 %v55_v45 }
  0x67   :  { %286 = vmatprep.mubr.f32.mxu0 %v1988_v4 }
  0x6a   :  { %287 = vmatmul.mubr.f32.gmra.mxu0 %v56_v50 }
  0x6b   :  { %292 = vmatprep.mubr.f32.mxu0 %v1988_v4 }
  0x6e   :  { %293 = vmatmul.mubr.f32.gmra.mxu0 %v57_v53  ;;  %v870_v53 = vld [vmem:[%s3385_s6 + $0x30] sm:$0xff] }
  0x6f   :  { %298 = vmatprep.mubr.f32.mxu0 %v1988_v4  ;;  %933 = vmatpush1.msra.mxu0 %v870_v53 }
  0x72   :  { %299 = vmatmul.mubr.f32.gmra.mxu0 %v58_v54 }
  0x73   :  { %304 = vmatprep.mubr.f32.mxu0 %v1988_v4 }
  0x76   :  { %305 = vmatmul.mubr.f32.gmra.mxu0 %v59_v55 }
  0x77   :  { %310 = vmatprep.mubr.f32.mxu0 %v1988_v4 }
  0x7a   :  { %311 = vmatmul.mubr.f32.gmra.mxu0 %v60_v56 }
  0x7b   :  { %316 = vmatprep.mubr.f32.mxu0 %v1988_v4 }
  0x7e   :  { %317 = vmatmul.mubr.f32.gmra.mxu0 %v61_v57  ;;  %v869_v57 = vld [vmem:[%s3385_s6 + $0x28] sm:$0xff] }
  0x7f   :  { %322 = vmatprep.mubr.f32.mxu0 %v1988_v4  ;;  %934 = vmatprep.subr.mxu0 %v869_v57 }
  0x82   :  { %323 = vmatmul.mubr.f32.gmra.mxu0 %v62_v58 }
  0x83   :  { %328 = vmatprep.mubr.f32.mxu0 %v1988_v4 }
  0x86   :  { %329 = vmatmul.mubr.f32.gmra.mxu0 %v63_v59  ;;  %v868_v59 = vld [vmem:[%s3385_s6 + $0x20] sm:$0xff] }
  0x87   :  { %334 = vmatprep.mubr.f32.mxu0 %v1988_v4  ;;  %935 = vmatpush1.msra.mxu0 %v868_v59 }
  0x8a   :  { %335 = vmatmul.mubr.f32.gmra.mxu0 %v64_v60 }
  0x8b   :  { %340 = vmatprep.mubr.f32.mxu0 %v1988_v4 }
  0x8e   :  { %341 = vmatmul.mubr.f32.gmra.mxu0 %v65_v61  ;;  %v867_v61 = vld [vmem:[%s3385_s6 + $0x18] sm:$0xff] }
  0x8f   :  { %346 = vmatprep.mubr.f32.mxu0 %v1988_v4  ;;  %936 = vmatprep.subr.mxu0 %v867_v61 }
  0x92   :  { %347 = vmatmul.mubr.f32.gmra.mxu0 %v66_v62 }
  0x93   :  { %352 = vmatprep.mubr.f32.mxu0 %v1988_v4 }
  0x96   :  { %353 = vmatmul.mubr.f32.gmra.mxu0 %v67_v63  ;;  %v866_v63 = vld [vmem:[%s3385_s6 + $0x10] sm:$0xff] }
  0x97   :  { %358 = vmatprep.mubr.f32.mxu0 %v1988_v4  ;;  %937 = vmatpush1.msra.mxu0 %v866_v63 }
  0x9a   :  { %359 = vmatmul.mubr.f32.gmra.mxu0 %v68_v0 }
  0x9b   :  { %364 = vmatprep.mubr.f32.mxu0 %v1988_v4 }
  0x9e   :  { %365 = vmatmul.mubr.f32.gmra.mxu0 %v69_v1 }
  0x9f   :  { %972 = vmatprep.mubr.f32.mxu0 %v1988_v4 }
  0xe2   :  { %v180_v22 = vpop.f32.mrf.mxu0 }
  0xe3   :  { %v181_v25 = vadd.f32 %v180_v22, %v2514_v20 }
  0xe4   :  { %v182_v26 = vpop.f32.mrf.mxu0 }
  0xe5   :  { %v183_v27 = vadd.f32 %v182_v26, %v2517_v21  ;;  %v371_v34 = vmax.f32 %v181_v25, 0.0 }
  0xe6   :  { %v186_v28 = vpop.f32.mrf.mxu0 }
  0xe7   :  { %v372_v32 = vmax.f32 %v183_v27, 0.0  ;;  %v187_v35 = vadd.f32 %v186_v28, %v2514_v20 }
  0xe8   :  { %v188_v36 = vpop.f32.mrf.mxu0 }
  0xe9   :  { %v189_v38 = vadd.f32 %v188_v36, %v2517_v21  ;;  %575 = vmatprep.mubr.f32.mxu1 %v372_v32  ;;  %v373_v44 = vmax.f32 %v187_v35, 0.0 }
  0xea   :  { %v192_v40 = vpop.f32.mrf.mxu0  ;;  %576 = vmatmul.mubr.f32.vlgmr.msra.gmra.mxu1 %v371_v34 }
  0xeb   :  { %v374_v42 = vmax.f32 %v189_v38, 0.0  ;;  %v193_v45 = vadd.f32 %v192_v40, %v2514_v20 }
  0xec   :  { %v194_v46 = vpop.f32.mrf.mxu0 }
  0xed   :  { %v195_v48 = vadd.f32 %v194_v46, %v2517_v21  ;;  %581 = vmatprep.mubr.f32.mxu1 %v374_v42  ;;  %v375_v54 = vmax.f32 %v193_v45, 0.0 }
  0xee   :  { %v198_v50 = vpop.f32.mrf.mxu0  ;;  %582 = vmatmul.mubr.f32.gmra.mxu1 %v373_v44 }
  0xef   :  { %v376_v52 = vmax.f32 %v195_v48, 0.0  ;;  %v199_v55 = vadd.f32 %v198_v50, %v2514_v20 }
  0xf0   :  { %v200_v56 = vpop.f32.mrf.mxu0 }
  0xf1   :  { %v201_v58 = vadd.f32 %v200_v56, %v2517_v21  ;;  %587 = vmatprep.mubr.f32.mxu1 %v376_v52  ;;  %v377_v0 = vmax.f32 %v199_v55, 0.0 }
  0xf2   :  { %v204_v60 = vpop.f32.mrf.mxu0  ;;  %588 = vmatmul.mubr.f32.gmra.mxu1 %v375_v54 }
  0xf3   :  { %v378_v62 = vmax.f32 %v201_v58, 0.0  ;;  %v205_v1 = vadd.f32 %v204_v60, %v2514_v20 }
  0xf4   :  { %v206_v2 = vpop.f32.mrf.mxu0 }
  0xf5   :  { %v207_v3 = vadd.f32 %v206_v2, %v2517_v21  ;;  %593 = vmatprep.mubr.f32.mxu1 %v378_v62  ;;  %v379_v7 = vmax.f32 %v205_v1, 0.0 }
  0xf6   :  { %v210_v5 = vpop.f32.mrf.mxu0  ;;  %594 = vmatmul.mubr.f32.gmra.mxu1 %v377_v0 }
  0xf7   :  { %v380_v6 = vmax.f32 %v207_v3, 0.0  ;;  %v211_v8 = vadd.f32 %v210_v5, %v2514_v20 }
  0xf8   :  { %v212_v9 = vpop.f32.mrf.mxu0 }
  0xf9   :  { %v213_v10 = vadd.f32 %v212_v9, %v2517_v21  ;;  %599 = vmatprep.mubr.f32.mxu1 %v380_v6  ;;  %v381_v13 = vmax.f32 %v211_v8, 0.0 }
  0xfa   :  { %v216_v11 = vpop.f32.mrf.mxu0  ;;  %600 = vmatmul.mubr.f32.gmra.mxu1 %v379_v7 }
  0xfb   :  { %v382_v12 = vmax.f32 %v213_v10, 0.0  ;;  %v217_v14 = vadd.f32 %v216_v11, %v2514_v20 }
  0xfc   :  { %v218_v16 = vpop.f32.mrf.mxu0 }
  0xfd   :  { %v219_v18 = vadd.f32 %v218_v16, %v2517_v21  ;;  %605 = vmatprep.mubr.f32.mxu1 %v382_v12  ;;  %v383_v23 = vmax.f32 %v217_v14, 0.0 }
  0xfe   :  { %v222_v19 = vpop.f32.mrf.mxu0  ;;  %606 = vmatmul.mubr.f32.gmra.mxu1 %v381_v13 }
  0xff   :  { %v384_v22 = vmax.f32 %v219_v18, 0.0  ;;  %v223_v24 = vadd.f32 %v222_v19, %v2514_v20 }
 0x100   :  { %v224_v25 = vpop.f32.mrf.mxu0 }
 0x101   :  { %v225_v26 = vadd.f32 %v224_v25, %v2517_v21  ;;  %611 = vmatprep.mubr.f32.mxu1 %v384_v22  ;;  %v385_v29 = vmax.f32 %v223_v24, 0.0 }
 0x102   :  { %v228_v27 = vpop.f32.mrf.mxu0  ;;  %612 = vmatmul.mubr.f32.gmra.mxu1 %v383_v23 }
 0x103   :  { %v386_v28 = vmax.f32 %v225_v26, 0.0  ;;  %v229_v30 = vadd.f32 %v228_v27, %v2514_v20 }
 0x104   :  { %v230_v31 = vpop.f32.mrf.mxu0 }
 0x105   :  { %v231_v32 = vadd.f32 %v230_v31, %v2517_v21  ;;  %617 = vmatprep.mubr.f32.mxu1 %v386_v28  ;;  %v387_v35 = vmax.f32 %v229_v30, 0.0 }
 0x106   :  { %v234_v33 = vpop.f32.mrf.mxu0  ;;  %618 = vmatmul.mubr.f32.gmra.mxu1 %v385_v29 }
 0x107   :  { %v388_v34 = vmax.f32 %v231_v32, 0.0  ;;  %v235_v36 = vadd.f32 %v234_v33, %v2514_v20 }
 0x108   :  { %v236_v37 = vpop.f32.mrf.mxu0 }
 0x109   :  { %v237_v38 = vadd.f32 %v236_v37, %v2517_v21  ;;  %623 = vmatprep.mubr.f32.mxu1 %v388_v34  ;;  %v389_v41 = vmax.f32 %v235_v36, 0.0  ;;  %v865_v34 = vld [vmem:[%s3385_s6 + $0x8] sm:$0xff] }
 0x10a   :  { %v240_v39 = vpop.f32.mrf.mxu0  ;;  %624 = vmatmul.mubr.f32.gmra.mxu1 %v387_v35  ;;  %v864_v35 = vld [vmem:[%s3385_s6] sm:$0xff]  ;;  %938 = vmatprep.subr.mxu0 %v865_v34 }
 0x10b   :  { %v390_v40 = vmax.f32 %v237_v38, 0.0  ;;  %v241_v42 = vadd.f32 %v240_v39, %v2514_v20  ;;  %939 = vmatpush1.msra.mxu0 %v864_v35 }
 0x10c   :  { %v242_v43 = vpop.f32.mrf.mxu0  ;;  %1268 = vmatprep.subr.mxu0 %v1988_v4 }
 0x10d   :  { %v243_v44 = vadd.f32 %v242_v43, %v2517_v21  ;;  %629 = vmatprep.mubr.f32.mxu1 %v390_v40  ;;  %v391_v47 = vmax.f32 %v241_v42, 0.0 }
 0x10e   :  { %v246_v45 = vpop.f32.mrf.mxu0  ;;  %630 = vmatmul.mubr.f32.gmra.mxu1 %v389_v41 }
 0x10f   :  { %v392_v46 = vmax.f32 %v243_v44, 0.0  ;;  %v247_v48 = vadd.f32 %v246_v45, %v2514_v20 }
 0x110   :  { %v248_v49 = vpop.f32.mrf.mxu0 }
 0x111   :  { %v249_v50 = vadd.f32 %v248_v49, %v2517_v21  ;;  %635 = vmatprep.mubr.f32.mxu1 %v392_v46  ;;  %v393_v53 = vmax.f32 %v247_v48, 0.0 }
 0x112   :  { %v252_v51 = vpop.f32.mrf.mxu0  ;;  %636 = vmatmul.mubr.f32.gmra.mxu1 %v391_v47 }
 0x113   :  { %v394_v52 = vmax.f32 %v249_v50, 0.0  ;;  %v253_v54 = vadd.f32 %v252_v51, %v2514_v20 }
 0x114   :  { %v254_v55 = vpop.f32.mrf.mxu0 }
 0x115   :  { %v255_v56 = vadd.f32 %v254_v55, %v2517_v21  ;;  %641 = vmatprep.mubr.f32.mxu1 %v394_v52  ;;  %v395_v59 = vmax.f32 %v253_v54, 0.0 }
 0x116   :  { %v258_v57 = vpop.f32.mrf.mxu0  ;;  %642 = vmatmul.mubr.f32.gmra.mxu1 %v393_v53 }
 0x117   :  { %v396_v58 = vmax.f32 %v255_v56, 0.0  ;;  %v259_v60 = vadd.f32 %v258_v57, %v2514_v20 }
 0x118   :  { %v260_v61 = vpop.f32.mrf.mxu0 }
 0x119   :  { %v261_v62 = vadd.f32 %v260_v61, %v2517_v21  ;;  %647 = vmatprep.mubr.f32.mxu1 %v396_v58  ;;  %v397_v1 = vmax.f32 %v259_v60, 0.0 }
 0x11a   :  { %v264_v63 = vpop.f32.mrf.mxu0  ;;  %648 = vmatmul.mubr.f32.gmra.mxu1 %v395_v59 }
 0x11b   :  { %v398_v0 = vmax.f32 %v261_v62, 0.0  ;;  %v265_v2 = vadd.f32 %v264_v63, %v2514_v20 }
 0x11c   :  { %v266_v3 = vpop.f32.mrf.mxu0 }
 0x11d   :  { %v267_v5 = vadd.f32 %v266_v3, %v2517_v21  ;;  %653 = vmatprep.mubr.f32.mxu1 %v398_v0  ;;  %v399_v8 = vmax.f32 %v265_v2, 0.0 }
 0x11e   :  { %v270_v6 = vpop.f32.mrf.mxu0  ;;  %654 = vmatmul.mubr.f32.gmra.mxu1 %v397_v1 }
 0x11f   :  { %v400_v7 = vmax.f32 %v267_v5, 0.0  ;;  %v271_v9 = vadd.f32 %v270_v6, %v2514_v20 }
 0x120   :  { %v272_v10 = vpop.f32.mrf.mxu0 }
 0x121   :  { %v273_v11 = vadd.f32 %v272_v10, %v2517_v21  ;;  %659 = vmatprep.mubr.f32.mxu1 %v400_v7  ;;  %v401_v14 = vmax.f32 %v271_v9, 0.0 }
 0x122   :  { %v276_v12 = vpop.f32.mrf.mxu0  ;;  %660 = vmatmul.mubr.f32.gmra.mxu1 %v399_v8 }
 0x123   :  { %v402_v13 = vmax.f32 %v273_v11, 0.0  ;;  %v277_v16 = vadd.f32 %v276_v12, %v2514_v20 }
 0x124   :  { %v278_v18 = vpop.f32.mrf.mxu0 }
 0x125   :  { %v279_v19 = vadd.f32 %v278_v18, %v2517_v21  ;;  %665 = vmatprep.mubr.f32.mxu1 %v402_v13  ;;  %v403_v24 = vmax.f32 %v277_v16, 0.0 }
 0x126   :  { %v282_v22 = vpop.f32.mrf.mxu0  ;;  %666 = vmatmul.mubr.f32.gmra.mxu1 %v401_v14 }
 0x127   :  { %v404_v23 = vmax.f32 %v279_v19, 0.0  ;;  %v283_v25 = vadd.f32 %v282_v22, %v2514_v20 }
 0x128   :  { %v284_v26 = vpop.f32.mrf.mxu0 }
 0x129   :  { %v285_v27 = vadd.f32 %v284_v26, %v2517_v21  ;;  %671 = vmatprep.mubr.f32.mxu1 %v404_v23  ;;  %v405_v30 = vmax.f32 %v283_v25, 0.0 }
 0x12a   :  { %v288_v28 = vpop.f32.mrf.mxu0  ;;  %672 = vmatmul.mubr.f32.gmra.mxu1 %v403_v24 }
 0x12b   :  { %v406_v29 = vmax.f32 %v285_v27, 0.0  ;;  %v289_v31 = vadd.f32 %v288_v28, %v2514_v20 }
 0x12c   :  { %v290_v32 = vpop.f32.mrf.mxu0 }
 0x12d   :  { %v291_v33 = vadd.f32 %v290_v32, %v2517_v21  ;;  %677 = vmatprep.mubr.f32.mxu1 %v406_v29  ;;  %v407_v38 = vmax.f32 %v289_v31, 0.0 }
 0x12e   :  { %v294_v36 = vpop.f32.mrf.mxu0  ;;  %678 = vmatmul.mubr.f32.gmra.mxu1 %v405_v30 }
 0x12f   :  { %v408_v37 = vmax.f32 %v291_v33, 0.0  ;;  %v295_v39 = vadd.f32 %v294_v36, %v2514_v20 }
 0x130   :  { %v296_v40 = vpop.f32.mrf.mxu0 }
 0x131   :  { %v297_v41 = vadd.f32 %v296_v40, %v2517_v21  ;;  %683 = vmatprep.mubr.f32.mxu1 %v408_v37  ;;  %v409_v44 = vmax.f32 %v295_v39, 0.0 }
 0x132   :  { %v300_v42 = vpop.f32.mrf.mxu0  ;;  %684 = vmatmul.mubr.f32.gmra.mxu1 %v407_v38 }
 0x133   :  { %v410_v43 = vmax.f32 %v297_v41, 0.0  ;;  %v301_v45 = vadd.f32 %v300_v42, %v2514_v20 }
 0x134   :  { %v302_v46 = vpop.f32.mrf.mxu0 }
 0x135   :  { %v303_v47 = vadd.f32 %v302_v46, %v2517_v21  ;;  %689 = vmatprep.mubr.f32.mxu1 %v410_v43  ;;  %v411_v50 = vmax.f32 %v301_v45, 0.0 }
 0x136   :  { %v306_v48 = vpop.f32.mrf.mxu0  ;;  %690 = vmatmul.mubr.f32.gmra.mxu1 %v409_v44 }
 0x137   :  { %v412_v49 = vmax.f32 %v303_v47, 0.0  ;;  %v307_v51 = vadd.f32 %v306_v48, %v2514_v20 }
 0x138   :  { %v308_v52 = vpop.f32.mrf.mxu0 }
 0x139   :  { %v309_v53 = vadd.f32 %v308_v52, %v2517_v21  ;;  %695 = vmatprep.mubr.f32.mxu1 %v412_v49  ;;  %v413_v56 = vmax.f32 %v307_v51, 0.0 }
 0x13a   :  { %v312_v54 = vpop.f32.mrf.mxu0  ;;  %696 = vmatmul.mubr.f32.gmra.mxu1 %v411_v50 }
 0x13b   :  { %v414_v55 = vmax.f32 %v309_v53, 0.0  ;;  %v313_v57 = vadd.f32 %v312_v54, %v2514_v20 }
 0x13c   :  { %v314_v58 = vpop.f32.mrf.mxu0 }
 0x13d   :  { %v315_v59 = vadd.f32 %v314_v58, %v2517_v21  ;;  %701 = vmatprep.mubr.f32.mxu1 %v414_v55  ;;  %v415_v62 = vmax.f32 %v313_v57, 0.0  ;;  %v2647_v57 = vld [vmem:[%s3387_s8 + $0x78] sm:$0xff]  ;;  %v2668_v58 = vld [vmem:[%s3387_s8 + $0x60] sm:$0xff] }
 0x13e   :  { %v318_v60 = vpop.f32.mrf.mxu0  ;;  %702 = vmatmul.mubr.f32.gmra.mxu1 %v413_v56 }
 0x13f   :  { %v416_v61 = vmax.f32 %v315_v59, 0.0  ;;  %v319_v63 = vadd.f32 %v318_v60, %v2514_v20  ;;  %1802 = vmatpush1.msra.mxu1 %v2647_v57  ;;  %v2675_v59 = vld [vmem:[%s3387_s8 + $0x58] sm:$0xff]  ;;  %v2682_v60 = vld [vmem:[%s3387_s8 + $0x50] sm:$0xff] }
 0x140   :  { %v320_v0 = vpop.f32.mrf.mxu0  ;;  %1771 = vmatprep.subr.mxu1 %v1988_v4 }
 0x141   :  { %v321_v1 = vadd.f32 %v320_v0, %v2517_v21  ;;  %707 = vmatprep.mubr.f32.mxu1 %v416_v61  ;;  %v417_v5 = vmax.f32 %v319_v63, 0.0  ;;  %v499_v61 = vld [vmem:[%s3384_s5] sm:$0x3] }
 0x142   :  { %v324_v2 = vpop.f32.mrf.mxu0  ;;  %708 = vmatmul.mubr.f32.gmra.mxu1 %v415_v62  ;;  %v2692_v62 = vld [vmem:[%s3387_s8 + $0x48] sm:$0xff]  ;;  %v2696_v63 = vrot.slane %v499_v61, %v2500_v15  ;;  %v2700_v0 = vrot.slane %v499_v61, %v2505_v17 }
 0x143   :  { %v418_v3 = vmax.f32 %v321_v1, 0.0  ;;  %v325_v6 = vadd.f32 %v324_v2, %v2514_v20  ;;  %v2705_v1 = vld [vmem:[%s3387_s8 + $0x40] sm:$0xff] }
 0x144   :  { %v326_v7 = vpop.f32.mrf.mxu0 }
 0x145   :  { %v327_v8 = vadd.f32 %v326_v7, %v2517_v21  ;;  %713 = vmatprep.mubr.f32.mxu1 %v418_v3  ;;  %v419_v11 = vmax.f32 %v325_v6, 0.0  ;;  %v768_v6 = vld [vmem:[%s3380_s1] sm:$0xff] }
 0x146   :  { %v330_v9 = vpop.f32.mrf.mxu0  ;;  %714 = vmatmul.mubr.f32.gmra.mxu1 %v417_v5 }
 0x147   :  { %v420_v10 = vmax.f32 %v327_v8, 0.0  ;;  %v331_v12 = vadd.f32 %v330_v9, %v2514_v20  ;;  %v2720_v8 = vld [vmem:[%s3387_s8 + $0x38] sm:$0xff] }
 0x148   :  { %v332_v13 = vpop.f32.mrf.mxu0 }
 0x149   :  { %v333_v14 = vadd.f32 %v332_v13, %v2517_v21  ;;  %719 = vmatprep.mubr.f32.mxu1 %v420_v10  ;;  %v421_v19 = vmax.f32 %v331_v12, 0.0  ;;  %v2731_v12 = vld [vmem:[%s3387_s8 + $0x30] sm:$0xff] }
 0x14a   :  { %v336_v16 = vpop.f32.mrf.mxu0  ;;  %720 = vmatmul.mubr.f32.gmra.mxu1 %v419_v11 }
 0x14b   :  { %v422_v18 = vmax.f32 %v333_v14, 0.0  ;;  %v337_v22 = vadd.f32 %v336_v16, %v2514_v20  ;;  %v769_v14 = vld [vmem:[%s3380_s1 + $0x8] sm:$0xff] }
 0x14c   :  { %v338_v23 = vpop.f32.mrf.mxu0 }
 0x14d   :  { %v339_v24 = vadd.f32 %v338_v23, %v2517_v21  ;;  %725 = vmatprep.mubr.f32.mxu1 %v422_v18  ;;  %v423_v27 = vmax.f32 %v337_v22, 0.0 }
 0x14e   :  { %v342_v25 = vpop.f32.mrf.mxu0  ;;  %726 = vmatmul.mubr.f32.gmra.mxu1 %v421_v19  ;;  %v2745_v19 = vld [vmem:[%s3387_s8 + $0x28] sm:$0xff] }
 0x14f   :  { %v424_v26 = vmax.f32 %v339_v24, 0.0  ;;  %v343_v28 = vadd.f32 %v342_v25, %v2514_v20  ;;  %v2756_v25 = vld [vmem:[%s3387_s8 + $0x20] sm:$0xff] }
 0x150   :  { %v344_v29 = vpop.f32.mrf.mxu0 }
 0x151   :  { %v345_v30 = vadd.f32 %v344_v29, %v2517_v21  ;;  %731 = vmatprep.mubr.f32.mxu1 %v424_v26  ;;  %v425_v33 = vmax.f32 %v343_v28, 0.0 }
 0x152   :  { %v348_v31 = vpop.f32.mrf.mxu0  ;;  %732 = vmatmul.mubr.f32.gmra.mxu1 %v423_v27  ;;  %v770_v27 = vld [vmem:[%s3380_s1 + $0x10] sm:$0xff] }
 0x153   :  { %v426_v32 = vmax.f32 %v345_v30, 0.0  ;;  %v349_v34 = vadd.f32 %v348_v31, %v2514_v20  ;;  %v2771_v30 = vld [vmem:[%s3387_s8 + $0x18] sm:$0xff] }
 0x154   :  { %v350_v35 = vpop.f32.mrf.mxu0 }
 0x155   :  { %v351_v36 = vadd.f32 %v350_v35, %v2517_v21  ;;  %737 = vmatprep.mubr.f32.mxu1 %v426_v32  ;;  %v427_v39 = vmax.f32 %v349_v34, 0.0  ;;  %v771_v35 = vld [vmem:[%s3380_s1 + $0x18] sm:$0xff] }
 0x156   :  { %v354_v37 = vpop.f32.mrf.mxu0  ;;  %738 = vmatmul.mubr.f32.gmra.mxu1 %v425_v33 }
 0x157   :  { %v428_v38 = vmax.f32 %v351_v36, 0.0  ;;  %v355_v40 = vadd.f32 %v354_v37, %v2514_v20  ;;  %v2789_v36 = vld [vmem:[%s3387_s8 + $0x10] sm:$0xff] }
 0x158   :  { %v356_v41 = vpop.f32.mrf.mxu0 }
 0x159   :  { %v357_v42 = vadd.f32 %v356_v41, %v2517_v21  ;;  %743 = vmatprep.mubr.f32.mxu1 %v428_v38  ;;  %v429_v45 = vmax.f32 %v355_v40, 0.0 }
 0x15a   :  { %v360_v43 = vpop.f32.mrf.mxu0  ;;  %744 = vmatmul.mubr.f32.gmra.mxu1 %v427_v39 }
 0x15b   :  { %v430_v44 = vmax.f32 %v357_v42, 0.0  ;;  %v361_v46 = vadd.f32 %v360_v43, %v2514_v20  ;;  %v772_v43 = vld [vmem:[%s3380_s1 + $0x20] sm:$0xff] }
 0x15c   :  { %v362_v47 = vpop.f32.mrf.mxu0 }
 0x15d   :  { %v363_v48 = vadd.f32 %v362_v47, %v2517_v21  ;;  %749 = vmatprep.mubr.f32.mxu1 %v430_v44  ;;  %v431_v51 = vmax.f32 %v361_v46, 0.0  ;;  %v2812_v44 = vld [vmem:[%s3387_s8 + $0x8] sm:$0xff] }
 0x15e   :  { %v366_v49 = vpop.f32.mrf.mxu0  ;;  %750 = vmatmul.mubr.f32.gmra.mxu1 %v429_v45 }
 0x15f   :  { %v432_v50 = vmax.f32 %v363_v48, 0.0  ;;  %v367_v52 = vadd.f32 %v366_v49, %v2514_v20  ;;  %v2654_v20 = vld [vmem:[%s3387_s8 + $0x70] sm:$0xff] }
 0x160   :  { %v368_v53 = vpop.f32.mrf.mxu0  ;;  %1803 = vmatpush1.msra.mxu1 %v2654_v20 }
 0x161   :  { %v369_v54 = vadd.f32 %v368_v53, %v2517_v21  ;;  %755 = vmatprep.mubr.f32.mxu1 %v432_v50  ;;  %v433_v56 = vmax.f32 %v367_v52, 0.0  ;;  %1772 = vmatprep.subr.mxu1 %v1988_v4  ;;  %v2661_v21 = vld [vmem:[%s3387_s8 + $0x68] sm:$0xff]  ;;  %v2835_v52 = vld [vmem:[%s3387_s8] sm:$0xff] }
 0x162   :  { %756 = vmatmul.mubr.f32.gmra.mxu1 %v431_v51  ;;  %v773_v51 = vld [vmem:[%s3380_s1 + $0x28] sm:$0xff] }
 0x163   :  { %v434_v55 = vmax.f32 %v369_v54, 0.0  ;;  %1804 = vmatpush1.msra.mxu1 %v2661_v21 }
 0x164   :  { %1773 = vmatprep.subr.mxu1 %v1988_v4 }
 0x165   :  { %761 = vmatprep.mubr.f32.mxu1 %v434_v55  ;;  %1805 = vmatpush1.msra.mxu1 %v2668_v58 }
 0x166   :  { %762 = vmatmul.mubr.f32.gmra.mxu1 %v433_v56  ;;  %1774 = vmatprep.subr.mxu1 %v1988_v4 }
 0x167   :  { %1806 = vmatpush1.msra.mxu1 %v2675_v59 }
 0x168   :  { %1775 = vmatprep.subr.mxu1 %v1988_v4 }
 0x169   :  { %1807 = vmatpush1.msra.mxu1 %v2682_v60 }
 0x16a   :  { %1776 = vmatprep.subr.mxu1 %v1988_v4 }
 0x16b   :  { %1808 = vmatpush1.msra.mxu1 %v2692_v62 }
 0x16c   :  { %1777 = vmatprep.subr.mxu1 %v1988_v4 }
 0x16d   :  { %1809 = vmatpush1.msra.mxu1 %v2705_v1 }
 0x16e   :  { %1778 = vmatprep.subr.mxu1 %v1988_v4 }
 0x16f   :  { %1810 = vmatpush1.msra.mxu1 %v2720_v8 }
 0x170   :  { %1779 = vmatprep.subr.mxu1 %v1988_v4 }
 0x171   :  { %1811 = vmatpush1.msra.mxu1 %v2731_v12 }
 0x172   :  { %1780 = vmatprep.subr.mxu1 %v1988_v4 }
 0x173   :  { %1812 = vmatpush1.msra.mxu1 %v2745_v19 }
 0x174   :  { %1781 = vmatprep.subr.mxu1 %v1988_v4 }
 0x175   :  { %1813 = vmatpush1.msra.mxu1 %v2756_v25 }
 0x176   :  { %1782 = vmatprep.subr.mxu1 %v1988_v4 }
 0x177   :  { %1814 = vmatpush1.msra.mxu1 %v2771_v30 }
 0x178   :  { %1783 = vmatprep.subr.mxu1 %v1988_v4 }
 0x179   :  { %1815 = vmatpush1.msra.mxu1 %v2789_v36 }
 0x17a   :  { %1784 = vmatprep.subr.mxu1 %v1988_v4 }
 0x17b   :  { %1816 = vmatpush1.msra.mxu1 %v2812_v44 }
 0x17c   :  { %1785 = vmatprep.subr.mxu1 %v1988_v4 }
 0x17d   :  { %1817 = vmatpush1.msra.mxu1 %v2835_v52 }
 0x17e   :  { %1786 = vmatprep.subr.mxu1 %v1988_v4 }
 0x1aa   :  { %v577_v2 = vpop.f32.mrf.mxu1 }
 0x1ab   :  { %v578_v3 = vadd.f32 %v577_v2, %v2696_v63 }
 0x1ac   :  { %v579_v5 = vpop.f32.mrf.mxu1 }
 0x1ad   :  { %1685 = vst [vmem:[%s3390_s11] sm:$0xff] %v578_v3  ;;  %v580_v7 = vadd.f32 %v579_v5, %v2700_v0  ;;  %v2881_v5 = vld [vmem:[%s3387_s8 + $0xf0] sm:$0xff] }
 0x1ae   :  { %v583_v9 = vpop.f32.mrf.mxu1 }
 0x1af   :  { %v800_v10 = vmul.f32 %v768_v6, %v580_v7  ;;  %1686 = vst [vmem:[%s3390_s11 + $0x8] sm:$0xff] %v580_v7  ;;  %v584_v11 = vadd.f32 %v583_v9, %v2696_v63 }
 0x1b0   :  { %v585_v13 = vpop.f32.mrf.mxu1 }
 0x1b1   :  { %v832_v16 = vadd.f32 %v800_v10, %v578_v3  ;;  %1687 = vst [vmem:[%s3390_s11 + $0x10] sm:$0xff] %v584_v11  ;;  %v586_v18 = vadd.f32 %v585_v13, %v2700_v0  ;;  %v775_v3 = vld [vmem:[%s3380_s1 + $0x38] sm:$0xff]  ;;  %v1258_v13 = vld [vmem:[%s3387_s8 + $0xe8] sm:$0xff] }
 0x1b2   :  { %v589_v22 = vpop.f32.mrf.mxu1 }
 0x1b3   :  { %v801_v23 = vmul.f32 %v769_v14, %v586_v18  ;;  %1688 = vst [vmem:[%s3390_s11 + $0x18] sm:$0xff] %v586_v18  ;;  %v590_v24 = vadd.f32 %v589_v22, %v2696_v63  ;;  %973 = vmatmul.mubr.f32.vlgmr.msra.gmra.mxu0 %v832_v16 }
 0x1b4   :  { %v591_v26 = vpop.f32.mrf.mxu1  ;;  %978 = vmatprep.mubr.f32.mxu0 %v1988_v4  ;;  %1269 = vmatpush1.msra.mxu0 %v2647_v57 }
 0x1b5   :  { %1689 = vst [vmem:[%s3390_s11 + $0x20] sm:$0xff] %v590_v24  ;;  %v592_v28 = vadd.f32 %v591_v26, %v2700_v0  ;;  %v833_v29 = vadd.f32 %v801_v23, %v584_v11  ;;  %1270 = vmatprep.subr.mxu0 %v1988_v4 }
 0x1b6   :  { %v595_v31 = vpop.f32.mrf.mxu1  ;;  %1271 = vmatpush1.msra.mxu0 %v2654_v20 }
 0x1b7   :  { %v802_v32 = vmul.f32 %v770_v27, %v592_v28  ;;  %1690 = vst [vmem:[%s3390_s11 + $0x28] sm:$0xff] %v592_v28  ;;  %v596_v33 = vadd.f32 %v595_v31, %v2696_v63  ;;  %979 = vmatmul.mubr.f32.gmra.mxu0 %v833_v29  ;;  %1272 = vmatprep.subr.mxu0 %v1988_v4 }
 0x1b8   :  { %v597_v34 = vpop.f32.mrf.mxu1  ;;  %984 = vmatprep.mubr.f32.mxu0 %v1988_v4  ;;  %1273 = vmatpush1.msra.mxu0 %v2661_v21  ;;  %v774_v21 = vld [vmem:[%s3380_s1 + $0x30] sm:$0xff] }
 0x1b9   :  { %1691 = vst [vmem:[%s3390_s11 + $0x30] sm:$0xff] %v596_v33  ;;  %v598_v37 = vadd.f32 %v597_v34, %v2700_v0  ;;  %v834_v38 = vadd.f32 %v802_v32, %v590_v24  ;;  %1274 = vmatprep.subr.mxu0 %v1988_v4  ;;  %v777_v24 = vld [vmem:[%s3380_s1 + $0x48] sm:$0xff]  ;;  %v778_v32 = vld [vmem:[%s3380_s1 + $0x50] sm:$0xff] }
 0x1ba   :  { %v601_v39 = vpop.f32.mrf.mxu1  ;;  %1275 = vmatpush1.msra.mxu0 %v2668_v58  ;;  %v2858_v58 = vld [vmem:[%s3387_s8 + $0xf8] sm:$0xff] }
 0x1bb   :  { %v803_v40 = vmul.f32 %v771_v35, %v598_v37  ;;  %1692 = vst [vmem:[%s3390_s11 + $0x38] sm:$0xff] %v598_v37  ;;  %v602_v41 = vadd.f32 %v601_v39, %v2696_v63  ;;  %985 = vmatmul.mubr.f32.gmra.mxu0 %v834_v38  ;;  %1276 = vmatprep.subr.mxu0 %v1988_v4 }
 0x1bc   :  { %v603_v42 = vpop.f32.mrf.mxu1  ;;  %990 = vmatprep.mubr.f32.mxu0 %v1988_v4  ;;  %1277 = vmatpush1.msra.mxu0 %v2675_v59 }
 0x1bd   :  { %1693 = vst [vmem:[%s3390_s11 + $0x40] sm:$0xff] %v602_v41  ;;  %v604_v45 = vadd.f32 %v603_v42, %v2700_v0  ;;  %v835_v46 = vadd.f32 %v803_v40, %v596_v33  ;;  %1278 = vmatprep.subr.mxu0 %v1988_v4  ;;  %1818 = vmatpush2.msra.mxu1 %v2858_v58  ;;  %v1256_v33 = vld [vmem:[%s3387_s8 + $0xd8] sm:$0xff] }
 0x1be   :  { %v607_v47 = vpop.f32.mrf.mxu1  ;;  %1279 = vmatpush1.msra.mxu0 %v2682_v60  ;;  %1787 = vmatprep.subr.mxu1 %v1988_v4  ;;  %v779_v40 = vld [vmem:[%s3380_s1 + $0x58] sm:$0xff] }
 0x1bf   :  { %v804_v48 = vmul.f32 %v772_v43, %v604_v45  ;;  %1694 = vst [vmem:[%s3390_s11 + $0x48] sm:$0xff] %v604_v45  ;;  %v608_v49 = vadd.f32 %v607_v47, %v2696_v63  ;;  %991 = vmatmul.mubr.f32.gmra.mxu0 %v835_v46  ;;  %1280 = vmatprep.subr.mxu0 %v1988_v4 }
 0x1c0   :  { %v609_v50 = vpop.f32.mrf.mxu1  ;;  %996 = vmatprep.mubr.f32.mxu0 %v1988_v4  ;;  %1281 = vmatpush1.msra.mxu0 %v2692_v62 }
 0x1c1   :  { %1695 = vst [vmem:[%s3390_s11 + $0x50] sm:$0xff] %v608_v49  ;;  %v610_v53 = vadd.f32 %v609_v50, %v2700_v0  ;;  %v836_v54 = vadd.f32 %v804_v48, %v602_v41  ;;  %1282 = vmatprep.subr.mxu0 %v1988_v4  ;;  %1819 = vmatpush2.msra.mxu1 %v2881_v5  ;;  %v1255_v41 = vld [vmem:[%s3387_s8 + $0xd0] sm:$0xff]  ;;  %v780_v48 = vld [vmem:[%s3380_s1 + $0x60] sm:$0xff] }
 0x1c2   :  { %v613_v55 = vpop.f32.mrf.mxu1  ;;  %1283 = vmatpush1.msra.mxu0 %v2705_v1  ;;  %1788 = vmatprep.subr.mxu1 %v1988_v4 }
 0x1c3   :  { %v805_v56 = vmul.f32 %v773_v51, %v610_v53  ;;  %1696 = vst [vmem:[%s3390_s11 + $0x58] sm:$0xff] %v610_v53  ;;  %v614_v57 = vadd.f32 %v613_v55, %v2696_v63  ;;  %997 = vmatmul.mubr.f32.gmra.mxu0 %v836_v54  ;;  %1284 = vmatprep.subr.mxu0 %v1988_v4 }
 0x1c4   :  { %v615_v20 = vpop.f32.mrf.mxu1  ;;  %1002 = vmatprep.mubr.f32.mxu0 %v1988_v4  ;;  %1285 = vmatpush1.msra.mxu0 %v2720_v8 }
 0x1c5   :  { %1697 = vst [vmem:[%s3390_s11 + $0x60] sm:$0xff] %v614_v57  ;;  %v616_v59 = vadd.f32 %v615_v20, %v2700_v0  ;;  %v837_v60 = vadd.f32 %v805_v56, %v608_v49  ;;  %1286 = vmatprep.subr.mxu0 %v1988_v4  ;;  %1820 = vmatpush2.msra.mxu1 %v1258_v13  ;;  %v1254_v49 = vld [vmem:[%s3387_s8 + $0xc8] sm:$0xff] }
 0x1c6   :  { %v619_v61 = vpop.f32.mrf.mxu1  ;;  %1287 = vmatpush1.msra.mxu0 %v2731_v12  ;;  %v776_v12 = vld [vmem:[%s3380_s1 + $0x40] sm:$0xff]  ;;  %1789 = vmatprep.subr.mxu1 %v1988_v4  ;;  %v781_v56 = vld [vmem:[%s3380_s1 + $0x68] sm:$0xff] }
 0x1c7   :  { %v806_v62 = vmul.f32 %v774_v21, %v616_v59  ;;  %1698 = vst [vmem:[%s3390_s11 + $0x68] sm:$0xff] %v616_v59  ;;  %v620_v1 = vadd.f32 %v619_v61, %v2696_v63  ;;  %1003 = vmatmul.mubr.f32.gmra.mxu0 %v837_v60  ;;  %1288 = vmatprep.subr.mxu0 %v1988_v4  ;;  %v1252_v61 = vld [vmem:[%s3387_s8 + $0xb8] sm:$0xff] }
 0x1c8   :  { %v621_v2 = vpop.f32.mrf.mxu1  ;;  %1008 = vmatprep.mubr.f32.mxu0 %v1988_v4  ;;  %1289 = vmatpush1.msra.mxu0 %v2745_v19 }
 0x1c9   :  { %1699 = vst [vmem:[%s3390_s11 + $0x70] sm:$0xff] %v620_v1  ;;  %v622_v6 = vadd.f32 %v621_v2, %v2700_v0  ;;  %v838_v7 = vadd.f32 %v806_v62, %v614_v57  ;;  %1290 = vmatprep.subr.mxu0 %v1988_v4  ;;  %v1253_v57 = vld [vmem:[%s3387_s8 + $0xc0] sm:$0xff] }
 0x1ca   :  { %v625_v8 = vpop.f32.mrf.mxu1  ;;  %1291 = vmatpush1.msra.mxu0 %v2756_v25  ;;  %v1257_v25 = vld [vmem:[%s3387_s8 + $0xe0] sm:$0xff] }
 0x1cb   :  { %v807_v9 = vmul.f32 %v775_v3, %v622_v6  ;;  %1700 = vst [vmem:[%s3390_s11 + $0x78] sm:$0xff] %v622_v6  ;;  %v626_v10 = vadd.f32 %v625_v8, %v2696_v63  ;;  %1009 = vmatmul.mubr.f32.gmra.mxu0 %v838_v7  ;;  %1292 = vmatprep.subr.mxu0 %v1988_v4 }
 0x1cc   :  { %v627_v11 = vpop.f32.mrf.mxu1  ;;  %1014 = vmatprep.mubr.f32.mxu0 %v1988_v4  ;;  %1293 = vmatpush1.msra.mxu0 %v2771_v30 }
 0x1cd   :  { %1701 = vst [vmem:[%s3390_s11 + $0x80] sm:$0xff] %v626_v10  ;;  %v628_v14 = vadd.f32 %v627_v11, %v2700_v0  ;;  %v839_v16 = vadd.f32 %v807_v9, %v620_v1  ;;  %1294 = vmatprep.subr.mxu0 %v1988_v4  ;;  %1821 = vmatpush2.msra.mxu1 %v1257_v25  ;;  %v782_v1 = vld [vmem:[%s3380_s1 + $0x70] sm:$0xff]  ;;  %v1250_v9 = vld [vmem:[%s3387_s8 + $0xa8] sm:$0xff]  ;;  %v783_v11 = vld [vmem:[%s3380_s1 + $0x78] sm:$0xff] }
 0x1ce   :  { %v631_v18 = vpop.f32.mrf.mxu1  ;;  %1295 = vmatpush1.msra.mxu0 %v2789_v36  ;;  %1790 = vmatprep.subr.mxu1 %v1988_v4 }
 0x1cf   :  { %v808_v19 = vmul.f32 %v776_v12, %v628_v14  ;;  %1702 = vst [vmem:[%s3390_s11 + $0x88] sm:$0xff] %v628_v14  ;;  %v632_v22 = vadd.f32 %v631_v18, %v2696_v63  ;;  %1015 = vmatmul.mubr.f32.gmra.mxu0 %v839_v16  ;;  %1296 = vmatprep.subr.mxu0 %v1988_v4  ;;  %v1249_v14 = vld [vmem:[%s3387_s8 + $0xa0] sm:$0xff] }
 0x1d0   :  { %v633_v23 = vpop.f32.mrf.mxu1  ;;  %1020 = vmatprep.mubr.f32.mxu0 %v1988_v4  ;;  %1297 = vmatpush1.msra.mxu0 %v2812_v44 }
 0x1d1   :  { %1703 = vst [vmem:[%s3390_s11 + $0x90] sm:$0xff] %v632_v22  ;;  %v634_v26 = vadd.f32 %v633_v23, %v2700_v0  ;;  %v840_v27 = vadd.f32 %v808_v19, %v626_v10  ;;  %1298 = vmatprep.subr.mxu0 %v1988_v4  ;;  %1822 = vmatpush2.msra.mxu1 %v1256_v33  ;;  %v784_v23 = vld [vmem:[%s3380_s1 + $0x80] sm:$0xff] }
 0x1d2   :  { %v637_v28 = vpop.f32.mrf.mxu1  ;;  %1299 = vmatpush1.msra.mxu0 %v2835_v52  ;;  %1791 = vmatprep.subr.mxu1 %v1988_v4 }
 0x1d3   :  { %v809_v29 = vmul.f32 %v777_v24, %v634_v26  ;;  %1704 = vst [vmem:[%s3390_s11 + $0x98] sm:$0xff] %v634_v26  ;;  %v638_v30 = vadd.f32 %v637_v28, %v2696_v63  ;;  %1021 = vmatmul.mubr.f32.gmra.mxu0 %v840_v27  ;;  %1300 = vmatprep.subr.mxu0 %v1988_v4 }
 0x1d4   :  { %v639_v31 = vpop.f32.mrf.mxu1  ;;  %1026 = vmatprep.mubr.f32.mxu0 %v1988_v4  ;;  %1301 = vmatpush2.msra.mxu0 %v2858_v58 }
 0x1d5   :  { %1705 = vst [vmem:[%s3390_s11 + $0xa0] sm:$0xff] %v638_v30  ;;  %v640_v34 = vadd.f32 %v639_v31, %v2700_v0  ;;  %v841_v35 = vadd.f32 %v809_v29, %v632_v22  ;;  %1302 = vmatprep.subr.mxu0 %v1988_v4  ;;  %1823 = vmatpush2.msra.mxu1 %v1255_v41 }
 0x1d6   :  { %v643_v36 = vpop.f32.mrf.mxu1  ;;  %1303 = vmatpush2.msra.mxu0 %v2881_v5  ;;  %1792 = vmatprep.subr.mxu1 %v1988_v4  ;;  %v1251_v5 = vld [vmem:[%s3387_s8 + $0xb0] sm:$0xff] }
 0x1d7   :  { %v810_v37 = vmul.f32 %v778_v32, %v640_v34  ;;  %1706 = vst [vmem:[%s3390_s11 + $0xa8] sm:$0xff] %v640_v34  ;;  %v644_v38 = vadd.f32 %v643_v36, %v2696_v63  ;;  %1027 = vmatmul.mubr.f32.gmra.mxu0 %v841_v35  ;;  %1304 = vmatprep.subr.mxu0 %v1988_v4  ;;  %v1248_v36 = vld [vmem:[%s3387_s8 + $0x98] sm:$0xff] }
 0x1d8   :  { %v645_v39 = vpop.f32.mrf.mxu1  ;;  %1032 = vmatprep.mubr.f32.mxu0 %v1988_v4  ;;  %1305 = vmatpush2.msra.mxu0 %v1258_v13 }
 0x1d9   :  { %1707 = vst [vmem:[%s3390_s11 + $0xb0] sm:$0xff] %v644_v38  ;;  %v646_v42 = vadd.f32 %v645_v39, %v2700_v0  ;;  %v842_v43 = vadd.f32 %v810_v37, %v638_v30  ;;  %1306 = vmatprep.subr.mxu0 %v1988_v4  ;;  %1824 = vmatpush2.msra.mxu1 %v1254_v49  ;;  %v785_v30 = vld [vmem:[%s3380_s1 + $0x88] sm:$0xff] }
 0x1da   :  { %v649_v44 = vpop.f32.mrf.mxu1  ;;  %1307 = vmatpush2.msra.mxu0 %v1257_v25  ;;  %1793 = vmatprep.subr.mxu1 %v1988_v4 }
 0x1db   :  { %v811_v45 = vmul.f32 %v779_v40, %v646_v42  ;;  %1708 = vst [vmem:[%s3390_s11 + $0xb8] sm:$0xff] %v646_v42  ;;  %v650_v46 = vadd.f32 %v649_v44, %v2696_v63  ;;  %1033 = vmatmul.mubr.f32.gmra.mxu0 %v842_v43  ;;  %1308 = vmatprep.subr.mxu0 %v1988_v4 }
 0x1dc   :  { %v651_v47 = vpop.f32.mrf.mxu1  ;;  %1038 = vmatprep.mubr.f32.mxu0 %v1988_v4  ;;  %1309 = vmatpush2.msra.mxu0 %v1256_v33 }
 0x1dd   :  { %1709 = vst [vmem:[%s3390_s11 + $0xc0] sm:$0xff] %v650_v46  ;;  %v652_v50 = vadd.f32 %v651_v47, %v2700_v0  ;;  %v843_v51 = vadd.f32 %v811_v45, %v644_v38  ;;  %1310 = vmatprep.subr.mxu0 %v1988_v4  ;;  %1825 = vmatpush2.msra.mxu1 %v1253_v57  ;;  %v786_v38 = vld [vmem:[%s3380_s1 + $0x90] sm:$0xff]  ;;  %v1246_v45 = vld [vmem:[%s3387_s8 + $0x88] sm:$0xff]  ;;  %v787_v47 = vld [vmem:[%s3380_s1 + $0x98] sm:$0xff] }
 0x1de   :  { %v655_v52 = vpop.f32.mrf.mxu1  ;;  %1311 = vmatpush2.msra.mxu0 %v1255_v41  ;;  %1794 = vmatprep.subr.mxu1 %v1988_v4  ;;  %v1247_v41 = vld [vmem:[%s3387_s8 + $0x90] sm:$0xff] }
 0x1df   :  { %v812_v53 = vmul.f32 %v780_v48, %v652_v50  ;;  %1710 = vst [vmem:[%s3390_s11 + $0xc8] sm:$0xff] %v652_v50  ;;  %v656_v54 = vadd.f32 %v655_v52, %v2696_v63  ;;  %1039 = vmatmul.mubr.f32.gmra.mxu0 %v843_v51  ;;  %1312 = vmatprep.subr.mxu0 %v1988_v4  ;;  %v1245_v50 = vld [vmem:[%s3387_s8 + $0x80] sm:$0xff] }
 0x1e0   :  { %v657_v55 = vpop.f32.mrf.mxu1  ;;  %1044 = vmatprep.mubr.f32.mxu0 %v1988_v4  ;;  %1313 = vmatpush2.msra.mxu0 %v1254_v49 }
 0x1e1   :  { %1711 = vst [vmem:[%s3390_s11 + $0xd0] sm:$0xff] %v656_v54  ;;  %v658_v20 = vadd.f32 %v657_v55, %v2700_v0  ;;  %v844_v21 = vadd.f32 %v812_v53, %v650_v46  ;;  %1314 = vmatprep.subr.mxu0 %v1988_v4  ;;  %1826 = vmatpush2.msra.mxu1 %v1252_v61  ;;  %v788_v55 = vld [vmem:[%s3380_s1 + $0xa0] sm:$0xff] }
 0x1e2   :  { %v661_v58 = vpop.f32.mrf.mxu1  ;;  %1315 = vmatpush2.msra.mxu0 %v1253_v57  ;;  %1795 = vmatprep.subr.mxu1 %v1988_v4 }
 0x1e3   :  { %v813_v59 = vmul.f32 %v781_v56, %v658_v20  ;;  %1712 = vst [vmem:[%s3390_s11 + $0xd8] sm:$0xff] %v658_v20  ;;  %v662_v60 = vadd.f32 %v661_v58, %v2696_v63  ;;  %1045 = vmatmul.mubr.f32.gmra.mxu0 %v844_v21  ;;  %1316 = vmatprep.subr.mxu0 %v1988_v4 }
 0x1e4   :  { %v663_v62 = vpop.f32.mrf.mxu1  ;;  %1050 = vmatprep.mubr.f32.mxu0 %v1988_v4  ;;  %1317 = vmatpush2.msra.mxu0 %v1252_v61 }
 0x1e5   :  { %1713 = vst [vmem:[%s3390_s11 + $0xe0] sm:$0xff] %v662_v60  ;;  %v664_v2 = vadd.f32 %v663_v62, %v2700_v0  ;;  %v845_v3 = vadd.f32 %v813_v59, %v656_v54  ;;  %1318 = vmatprep.subr.mxu0 %v1988_v4  ;;  %1827 = vmatpush2.msra.mxu1 %v1251_v5 }
 0x1e6   :  { %v667_v6 = vpop.f32.mrf.mxu1  ;;  %1319 = vmatpush2.msra.mxu0 %v1251_v5  ;;  %1796 = vmatprep.subr.mxu1 %v1988_v4 }
 0x1e7   :  { %v814_v7 = vmul.f32 %v782_v1, %v664_v2  ;;  %1714 = vst [vmem:[%s3390_s11 + $0xe8] sm:$0xff] %v664_v2  ;;  %v668_v8 = vadd.f32 %v667_v6, %v2696_v63  ;;  %1051 = vmatmul.mubr.f32.gmra.mxu0 %v845_v3  ;;  %1320 = vmatprep.subr.mxu0 %v1988_v4  ;;  %v790_v6 = vld [vmem:[%s3380_s1 + $0xb0] sm:$0xff] }
 0x1e8   :  { %v669_v10 = vpop.f32.mrf.mxu1  ;;  %1056 = vmatprep.mubr.f32.mxu0 %v1988_v4  ;;  %1321 = vmatpush2.msra.mxu0 %v1250_v9 }
 0x1e9   :  { %1715 = vst [vmem:[%s3390_s11 + $0xf0] sm:$0xff] %v668_v8  ;;  %v670_v12 = vadd.f32 %v669_v10, %v2700_v0  ;;  %v846_v13 = vadd.f32 %v814_v7, %v662_v60  ;;  %1322 = vmatprep.subr.mxu0 %v1988_v4  ;;  %1828 = vmatpush2.msra.mxu1 %v1250_v9  ;;  %v789_v60 = vld [vmem:[%s3380_s1 + $0xa8] sm:$0xff] }
 0x1ea   :  { %v673_v16 = vpop.f32.mrf.mxu1  ;;  %1323 = vmatpush2.msra.mxu0 %v1249_v14  ;;  %1797 = vmatprep.subr.mxu1 %v1988_v4 }
 0x1eb   :  { %v815_v18 = vmul.f32 %v783_v11, %v670_v12  ;;  %1716 = vst [vmem:[%s3390_s11 + $0xf8] sm:$0xff] %v670_v12  ;;  %v674_v19 = vadd.f32 %v673_v16, %v2696_v63  ;;  %1057 = vmatmul.mubr.f32.gmra.mxu0 %v846_v13  ;;  %1324 = vmatprep.subr.mxu0 %v1988_v4  ;;  %v791_v13 = vld [vmem:[%s3380_s1 + $0xb8] sm:$0xff] }
 0x1ec   :  { %v675_v22 = vpop.f32.mrf.mxu1  ;;  %1062 = vmatprep.mubr.f32.mxu0 %v1988_v4  ;;  %1829 = vmatpush2.msra.mxu1 %v1249_v14 }
 0x1ed   :  { %1717 = vst [vmem:[%s3390_s11 + $0x100] sm:$0xff] %v674_v19  ;;  %v676_v24 = vadd.f32 %v675_v22, %v2700_v0  ;;  %v847_v25 = vadd.f32 %v815_v18, %v668_v8  ;;  %1798 = vmatprep.subr.mxu1 %v1988_v4  ;;  %1325 = vmatpush2.msra.mxu0 %v1248_v36 }
 0x1ee   :  { %v679_v26 = vpop.f32.mrf.mxu1  ;;  %1326 = vmatprep.subr.mxu0 %v1988_v4  ;;  %1830 = vmatpush2.msra.mxu1 %v1248_v36 }
 0x1ef   :  { %v816_v27 = vmul.f32 %v784_v23, %v676_v24  ;;  %1718 = vst [vmem:[%s3390_s11 + $0x108] sm:$0xff] %v676_v24  ;;  %v680_v28 = vadd.f32 %v679_v26, %v2696_v63  ;;  %1063 = vmatmul.mubr.f32.gmra.mxu0 %v847_v25  ;;  %1799 = vmatprep.subr.mxu1 %v1988_v4  ;;  %v792_v24 = vld [vmem:[%s3380_s1 + $0xc0] sm:$0xff] }
 0x1f0   :  { %v681_v29 = vpop.f32.mrf.mxu1  ;;  %1068 = vmatprep.mubr.f32.mxu0 %v1988_v4  ;;  %1327 = vmatpush2.msra.mxu0 %v1247_v41 }
 0x1f1   :  { %1719 = vst [vmem:[%s3390_s11 + $0x110] sm:$0xff] %v680_v28  ;;  %v682_v31 = vadd.f32 %v681_v29, %v2700_v0  ;;  %v848_v32 = vadd.f32 %v816_v27, %v674_v19  ;;  %1328 = vmatprep.subr.mxu0 %v1988_v4  ;;  %1831 = vmatpush2.msra.mxu1 %v1247_v41 }
 0x1f2   :  { %v685_v33 = vpop.f32.mrf.mxu1  ;;  %1329 = vmatpush2.msra.mxu0 %v1246_v45  ;;  %1800 = vmatprep.subr.mxu1 %v1988_v4 }
 0x1f3   :  { %v817_v34 = vmul.f32 %v785_v30, %v682_v31  ;;  %1720 = vst [vmem:[%s3390_s11 + $0x118] sm:$0xff] %v682_v31  ;;  %v686_v35 = vadd.f32 %v685_v33, %v2696_v63  ;;  %1069 = vmatmul.mubr.f32.gmra.mxu0 %v848_v32  ;;  %1330 = vmatprep.subr.mxu0 %v1988_v4  ;;  %v793_v31 = vld [vmem:[%s3380_s1 + $0xc8] sm:$0xff] }
 0x1f4   :  { %v687_v37 = vpop.f32.mrf.mxu1  ;;  %1074 = vmatprep.mubr.f32.mxu0 %v1988_v4  ;;  %1331 = vmatpush2.msra.mxu0 %v1245_v50 }
 0x1f5   :  { %1721 = vst [vmem:[%s3390_s11 + $0x120] sm:$0xff] %v686_v35  ;;  %v688_v39 = vadd.f32 %v687_v37, %v2700_v0  ;;  %v849_v40 = vadd.f32 %v817_v34, %v680_v28  ;;  %1832 = vmatpush2.msra.mxu1 %v1246_v45  ;;  %v795_v45 = vld [vmem:[%s3380_s1 + $0xd8] sm:$0xff] }
 0x1f6   :  { %v691_v42 = vpop.f32.mrf.mxu1  ;;  %1801 = vmatprep.subr.mxu1 %v1988_v4 }
 0x1f7   :  { %v818_v43 = vmul.f32 %v786_v38, %v688_v39  ;;  %1722 = vst [vmem:[%s3390_s11 + $0x128] sm:$0xff] %v688_v39  ;;  %v692_v44 = vadd.f32 %v691_v42, %v2696_v63  ;;  %1075 = vmatmul.mubr.f32.gmra.mxu0 %v849_v40  ;;  %1833 = vmatpush2.msra.mxu1 %v1245_v50  ;;  %v794_v38 = vld [vmem:[%s3380_s1 + $0xd0] sm:$0xff] }
 0x1f8   :  { %v693_v46 = vpop.f32.mrf.mxu1  ;;  %1080 = vmatprep.mubr.f32.mxu0 %v1988_v4 }
 0x1f9   :  { %1723 = vst [vmem:[%s3390_s11 + $0x130] sm:$0xff] %v692_v44  ;;  %v694_v48 = vadd.f32 %v693_v46, %v2700_v0  ;;  %v850_v49 = vadd.f32 %v818_v43, %v686_v35 }
 0x1fa   :  { %v697_v51 = vpop.f32.mrf.mxu1 }
 0x1fb   :  { %v819_v52 = vmul.f32 %v787_v47, %v694_v48  ;;  %1724 = vst [vmem:[%s3390_s11 + $0x138] sm:$0xff] %v694_v48  ;;  %v698_v53 = vadd.f32 %v697_v51, %v2696_v63  ;;  %1081 = vmatmul.mubr.f32.gmra.mxu0 %v850_v49 }
 0x1fc   :  { %v699_v54 = vpop.f32.mrf.mxu1  ;;  %1086 = vmatprep.mubr.f32.mxu0 %v1988_v4 }
 0x1fd   :  { %1725 = vst [vmem:[%s3390_s11 + $0x140] sm:$0xff] %v698_v53  ;;  %v700_v56 = vadd.f32 %v699_v54, %v2700_v0  ;;  %v851_v57 = vadd.f32 %v819_v52, %v692_v44  ;;  %v796_v52 = vld [vmem:[%s3380_s1 + $0xe0] sm:$0xff] }
 0x1fe   :  { %v703_v20 = vpop.f32.mrf.mxu1 }
 0x1ff   :  { %v820_v21 = vmul.f32 %v788_v55, %v700_v56  ;;  %1726 = vst [vmem:[%s3390_s11 + $0x148] sm:$0xff] %v700_v56  ;;  %v704_v58 = vadd.f32 %v703_v20, %v2696_v63  ;;  %1087 = vmatmul.mubr.f32.gmra.mxu0 %v851_v57 }
 0x200   :  { %v705_v59 = vpop.f32.mrf.mxu1  ;;  %1092 = vmatprep.mubr.f32.mxu0 %v1988_v4 }
 0x201   :  { %1727 = vst [vmem:[%s3390_s11 + $0x150] sm:$0xff] %v704_v58  ;;  %v706_v61 = vadd.f32 %v705_v59, %v2700_v0  ;;  %v852_v62 = vadd.f32 %v820_v21, %v698_v53  ;;  %v797_v21 = vld [vmem:[%s3380_s1 + $0xe8] sm:$0xff] }
 0x202   :  { %v709_v1 = vpop.f32.mrf.mxu1 }
 0x203   :  { %v821_v2 = vmul.f32 %v789_v60, %v706_v61  ;;  %1728 = vst [vmem:[%s3390_s11 + $0x158] sm:$0xff] %v706_v61  ;;  %v710_v3 = vadd.f32 %v709_v1, %v2696_v63  ;;  %1093 = vmatmul.mubr.f32.gmra.mxu0 %v852_v62 }
 0x204   :  { %v711_v5 = vpop.f32.mrf.mxu1  ;;  %1098 = vmatprep.mubr.f32.mxu0 %v1988_v4 }
 0x205   :  { %1729 = vst [vmem:[%s3390_s11 + $0x160] sm:$0xff] %v710_v3  ;;  %v712_v7 = vadd.f32 %v711_v5, %v2700_v0  ;;  %v853_v8 = vadd.f32 %v821_v2, %v704_v58  ;;  %v798_v2 = vld [vmem:[%s3380_s1 + $0xf0] sm:$0xff] }
 0x206   :  { %v715_v9 = vpop.f32.mrf.mxu1 }
 0x207   :  { %v822_v10 = vmul.f32 %v790_v6, %v712_v7  ;;  %1730 = vst [vmem:[%s3390_s11 + $0x168] sm:$0xff] %v712_v7  ;;  %v716_v11 = vadd.f32 %v715_v9, %v2696_v63  ;;  %1099 = vmatmul.mubr.f32.gmra.mxu0 %v853_v8 }
 0x208   :  { %v717_v12 = vpop.f32.mrf.mxu1  ;;  %1104 = vmatprep.mubr.f32.mxu0 %v1988_v4 }
 0x209   :  { %1731 = vst [vmem:[%s3390_s11 + $0x170] sm:$0xff] %v716_v11  ;;  %v718_v14 = vadd.f32 %v717_v12, %v2700_v0  ;;  %v854_v16 = vadd.f32 %v822_v10, %v710_v3  ;;  %v799_v10 = vld [vmem:[%s3380_s1 + $0xf8] sm:$0xff] }
 0x20a   :  { %v721_v18 = vpop.f32.mrf.mxu1 }
 0x20b   :  { %v823_v19 = vmul.f32 %v791_v13, %v718_v14  ;;  %1732 = vst [vmem:[%s3390_s11 + $0x178] sm:$0xff] %v718_v14  ;;  %v722_v22 = vadd.f32 %v721_v18, %v2696_v63  ;;  %1105 = vmatmul.mubr.f32.gmra.mxu0 %v854_v16  ;;  %v896_v14 = vld [vmem:[%s3386_s7] sm:$0x3] }
 0x20c   :  { %v723_v23 = vpop.f32.mrf.mxu1  ;;  %1110 = vmatprep.mubr.f32.mxu0 %v1988_v4  ;;  %v3270_v16 = vrot.slane %v896_v14, %v2500_v15  ;;  %v3273_v18 = vrot.slane %v896_v14, %v2505_v17 }
 0x20d   :  { %1733 = vst [vmem:[%s3390_s11 + $0x180] sm:$0xff] %v722_v22  ;;  %v724_v25 = vadd.f32 %v723_v23, %v2700_v0  ;;  %v855_v26 = vadd.f32 %v823_v19, %v716_v11 }
 0x20e   :  { %v727_v27 = vpop.f32.mrf.mxu1 }
 0x20f   :  { %v824_v28 = vmul.f32 %v792_v24, %v724_v25  ;;  %1734 = vst [vmem:[%s3390_s11 + $0x188] sm:$0xff] %v724_v25  ;;  %v728_v29 = vadd.f32 %v727_v27, %v2696_v63  ;;  %1111 = vmatmul.mubr.f32.gmra.mxu0 %v855_v26 }
 0x210   :  { %v729_v30 = vpop.f32.mrf.mxu1  ;;  %1116 = vmatprep.mubr.f32.mxu0 %v1988_v4 }
 0x211   :  { %v856_v32 = vadd.f32 %v824_v28, %v722_v22  ;;  %1735 = vst [vmem:[%s3390_s11 + $0x190] sm:$0xff] %v728_v29  ;;  %v730_v33 = vadd.f32 %v729_v30, %v2700_v0 }
 0x212   :  { %v733_v34 = vpop.f32.mrf.mxu1 }
 0x213   :  { %v825_v35 = vmul.f32 %v793_v31, %v730_v33  ;;  %1736 = vst [vmem:[%s3390_s11 + $0x198] sm:$0xff] %v730_v33  ;;  %v734_v36 = vadd.f32 %v733_v34, %v2696_v63  ;;  %1117 = vmatmul.mubr.f32.gmra.mxu0 %v856_v32 }
 0x214   :  { %v735_v37 = vpop.f32.mrf.mxu1  ;;  %1122 = vmatprep.mubr.f32.mxu0 %v1988_v4 }
 0x215   :  { %v857_v39 = vadd.f32 %v825_v35, %v728_v29  ;;  %1737 = vst [vmem:[%s3390_s11 + $0x1a0] sm:$0xff] %v734_v36  ;;  %v736_v40 = vadd.f32 %v735_v37, %v2700_v0 }
 0x216   :  { %v739_v41 = vpop.f32.mrf.mxu1 }
 0x217   :  { %v826_v42 = vmul.f32 %v794_v38, %v736_v40  ;;  %1738 = vst [vmem:[%s3390_s11 + $0x1a8] sm:$0xff] %v736_v40  ;;  %v740_v43 = vadd.f32 %v739_v41, %v2696_v63  ;;  %1123 = vmatmul.mubr.f32.gmra.mxu0 %v857_v39 }
 0x218   :  { %v741_v44 = vpop.f32.mrf.mxu1  ;;  %1128 = vmatprep.mubr.f32.mxu0 %v1988_v4 }
 0x219   :  { %v858_v46 = vadd.f32 %v826_v42, %v734_v36  ;;  %1739 = vst [vmem:[%s3390_s11 + $0x1b0] sm:$0xff] %v740_v43  ;;  %v742_v47 = vadd.f32 %v741_v44, %v2700_v0 }
 0x21a   :  { %v745_v48 = vpop.f32.mrf.mxu1 }
 0x21b   :  { %v827_v49 = vmul.f32 %v795_v45, %v742_v47  ;;  %1740 = vst [vmem:[%s3390_s11 + $0x1b8] sm:$0xff] %v742_v47  ;;  %v746_v50 = vadd.f32 %v745_v48, %v2696_v63  ;;  %1129 = vmatmul.mubr.f32.gmra.mxu0 %v858_v46 }
 0x21c   :  { %v747_v51 = vpop.f32.mrf.mxu1  ;;  %1134 = vmatprep.mubr.f32.mxu0 %v1988_v4 }
 0x21d   :  { %v859_v53 = vadd.f32 %v827_v49, %v740_v43  ;;  %1741 = vst [vmem:[%s3390_s11 + $0x1c0] sm:$0xff] %v746_v50  ;;  %v748_v54 = vadd.f32 %v747_v51, %v2700_v0 }
 0x21e   :  { %v751_v55 = vpop.f32.mrf.mxu1 }
 0x21f   :  { %v828_v56 = vmul.f32 %v796_v52, %v748_v54  ;;  %1742 = vst [vmem:[%s3390_s11 + $0x1c8] sm:$0xff] %v748_v54  ;;  %v752_v57 = vadd.f32 %v751_v55, %v2696_v63  ;;  %1135 = vmatmul.mubr.f32.gmra.mxu0 %v859_v53 }
 0x220   :  { %v753_v20 = vpop.f32.mrf.mxu1  ;;  %1140 = vmatprep.mubr.f32.mxu0 %v1988_v4 }
 0x221   :  { %v860_v58 = vadd.f32 %v828_v56, %v746_v50  ;;  %1743 = vst [vmem:[%s3390_s11 + $0x1d0] sm:$0xff] %v752_v57  ;;  %v754_v59 = vadd.f32 %v753_v20, %v2700_v0 }
 0x222   :  { %v757_v60 = vpop.f32.mrf.mxu1 }
 0x223   :  { %v829_v61 = vmul.f32 %v797_v21, %v754_v59  ;;  %1744 = vst [vmem:[%s3390_s11 + $0x1d8] sm:$0xff] %v754_v59  ;;  %v758_v62 = vadd.f32 %v757_v60, %v2696_v63  ;;  %1141 = vmatmul.mubr.f32.gmra.mxu0 %v860_v58 }
 0x224   :  { %v759_v1 = vpop.f32.mrf.mxu1  ;;  %1146 = vmatprep.mubr.f32.mxu0 %v1988_v4 }
 0x225   :  { %v861_v3 = vadd.f32 %v829_v61, %v752_v57  ;;  %1745 = vst [vmem:[%s3390_s11 + $0x1e0] sm:$0xff] %v758_v62  ;;  %v760_v5 = vadd.f32 %v759_v1, %v2700_v0 }
 0x226   :  { %v763_v6 = vpop.f32.mrf.mxu1 }
 0x227   :  { %v830_v7 = vmul.f32 %v798_v2, %v760_v5  ;;  %1746 = vst [vmem:[%s3390_s11 + $0x1e8] sm:$0xff] %v760_v5  ;;  %v764_v8 = vadd.f32 %v763_v6, %v2696_v63  ;;  %1147 = vmatmul.mubr.f32.gmra.mxu0 %v861_v3 }
 0x228   :  { %v765_v9 = vpop.f32.mrf.mxu1  ;;  %1152 = vmatprep.mubr.f32.mxu0 %v1988_v4 }
 0x229   :  { %v862_v11 = vadd.f32 %v830_v7, %v758_v62  ;;  %1747 = vst [vmem:[%s3390_s11 + $0x1f0] sm:$0xff] %v764_v8  ;;  %v766_v12 = vadd.f32 %v765_v9, %v2700_v0 }
 0x22b   :  { %v831_v13 = vmul.f32 %v799_v10, %v766_v12  ;;  %1748 = vst [vmem:[%s3390_s11 + $0x1f8] sm:$0xff] %v766_v12  ;;  %1153 = vmatmul.mubr.f32.gmra.mxu0 %v862_v11 }
 0x22c   :  { %1158 = vmatprep.mubr.f32.mxu0 %v1988_v4 }
 0x22d   :  { %v863_v63 = vadd.f32 %v831_v13, %v764_v8 }
 0x22f   :  { %1159 = vmatmul.mubr.f32.gmra.mxu0 %v863_v63 }
 0x273   :  { %v974_v0 = vpop.f32.mrf.mxu0 }
 0x274   :  { %v975_v19 = vadd.f32 %v974_v0, %v3270_v16 }
 0x275   :  { %v976_v22 = vpop.f32.mrf.mxu0 }
 0x276   :  { %v977_v23 = vadd.f32 %v976_v22, %v3273_v18  ;;  %v1165_v25 = vmax.f32 %v975_v19, 0.0 }
 0x277   :  { %v980_v24 = vpop.f32.mrf.mxu0 }
 0x278   :  { %v1166_v4 = vmax.f32 %v977_v23, 0.0  ;;  %v981_v26 = vadd.f32 %v980_v24, %v3270_v16 }
 0x279   :  { %v982_v27 = vpop.f32.mrf.mxu0 }
 0x27a   :  { %v983_v28 = vadd.f32 %v982_v27, %v3273_v18  ;;  %1332 = vmatprep.mubr.f32.mxu0 %v1166_v4  ;;  %v1167_v17 = vmax.f32 %v981_v26, 0.0 }
 0x27b   :  { %v986_v15 = vpop.f32.mrf.mxu0  ;;  %1333 = vmatmul.mubr.f32.vlgmr.msra.gmra.mxu0 %v1165_v25 }
 0x27c   :  { %v1168_v29 = vmax.f32 %v983_v28, 0.0  ;;  %v987_v30 = vadd.f32 %v986_v15, %v3270_v16 }
 0x27d   :  { %v988_v31 = vpop.f32.mrf.mxu0 }
 0x27e   :  { %v989_v32 = vadd.f32 %v988_v31, %v3273_v18  ;;  %1337 = vmatprep.mubr.f32.mxu0 %v1168_v29  ;;  %v1169_v35 = vmax.f32 %v987_v30, 0.0 }
 0x27f   :  { %v992_v33 = vpop.f32.mrf.mxu0  ;;  %1338 = vmatmul.mubr.f32.gmra.mxu0 %v1167_v17 }
 0x280   :  { %v1170_v34 = vmax.f32 %v989_v32, 0.0  ;;  %v993_v36 = vadd.f32 %v992_v33, %v3270_v16 }
 0x281   :  { %v994_v37 = vpop.f32.mrf.mxu0 }
 0x282   :  { %v995_v38 = vadd.f32 %v994_v37, %v3273_v18  ;;  %1342 = vmatprep.mubr.f32.mxu0 %v1170_v34  ;;  %v1171_v41 = vmax.f32 %v993_v36, 0.0 }
 0x283   :  { %v998_v39 = vpop.f32.mrf.mxu0  ;;  %1343 = vmatmul.mubr.f32.gmra.mxu0 %v1169_v35 }
 0x284   :  { %v1172_v40 = vmax.f32 %v995_v38, 0.0  ;;  %v999_v42 = vadd.f32 %v998_v39, %v3270_v16 }
 0x285   :  { %v1000_v43 = vpop.f32.mrf.mxu0 }
 0x286   :  { %v1001_v44 = vadd.f32 %v1000_v43, %v3273_v18  ;;  %1347 = vmatprep.mubr.f32.mxu0 %v1172_v40  ;;  %v1173_v47 = vmax.f32 %v999_v42, 0.0 }
 0x287   :  { %v1004_v45 = vpop.f32.mrf.mxu0  ;;  %1348 = vmatmul.mubr.f32.gmra.mxu0 %v1171_v41 }
 0x288   :  { %v1174_v46 = vmax.f32 %v1001_v44, 0.0  ;;  %v1005_v48 = vadd.f32 %v1004_v45, %v3270_v16 }
 0x289   :  { %v1006_v49 = vpop.f32.mrf.mxu0 }
 0x28a   :  { %v1007_v50 = vadd.f32 %v1006_v49, %v3273_v18  ;;  %1352 = vmatprep.mubr.f32.mxu1 %v1174_v46  ;;  %v1175_v53 = vmax.f32 %v1005_v48, 0.0 }
 0x28b   :  { %v1010_v51 = vpop.f32.mrf.mxu0  ;;  %1353 = vmatmul.mubr.f32.vlgmr.msra.gmra.mxu1 %v1173_v47 }
 0x28c   :  { %v1176_v52 = vmax.f32 %v1007_v50, 0.0  ;;  %v1011_v54 = vadd.f32 %v1010_v51, %v3270_v16 }
 0x28d   :  { %v1012_v55 = vpop.f32.mrf.mxu0 }
 0x28e   :  { %v1013_v56 = vadd.f32 %v1012_v55, %v3273_v18  ;;  %1357 = vmatprep.mubr.f32.mxu1 %v1176_v52  ;;  %v1177_v21 = vmax.f32 %v1011_v54, 0.0 }
 0x28f   :  { %v1016_v57 = vpop.f32.mrf.mxu0  ;;  %1358 = vmatmul.mubr.f32.gmra.mxu1 %v1175_v53 }
 0x290   :  { %v1178_v20 = vmax.f32 %v1013_v56, 0.0  ;;  %v1017_v58 = vadd.f32 %v1016_v57, %v3270_v16 }
 0x291   :  { %v1018_v59 = vpop.f32.mrf.mxu0 }
 0x292   :  { %v1019_v60 = vadd.f32 %v1018_v59, %v3273_v18  ;;  %1362 = vmatprep.mubr.f32.mxu1 %v1178_v20  ;;  %v1179_v1 = vmax.f32 %v1017_v58, 0.0 }
 0x293   :  { %v1022_v61 = vpop.f32.mrf.mxu0  ;;  %1363 = vmatmul.mubr.f32.gmra.mxu1 %v1177_v21 }
 0x294   :  { %v1180_v62 = vmax.f32 %v1019_v60, 0.0  ;;  %v1023_v2 = vadd.f32 %v1022_v61, %v3270_v16 }
 0x295   :  { %v1024_v3 = vpop.f32.mrf.mxu0 }
 0x296   :  { %v1025_v5 = vadd.f32 %v1024_v3, %v3273_v18  ;;  %1367 = vmatprep.mubr.f32.mxu1 %v1180_v62  ;;  %v1181_v8 = vmax.f32 %v1023_v2, 0.0 }
 0x297   :  { %v1028_v6 = vpop.f32.mrf.mxu0  ;;  %1368 = vmatmul.mubr.f32.gmra.mxu1 %v1179_v1 }
 0x298   :  { %v1182_v7 = vmax.f32 %v1025_v5, 0.0  ;;  %v1029_v9 = vadd.f32 %v1028_v6, %v3270_v16 }
 0x299   :  { %v1030_v10 = vpop.f32.mrf.mxu0 }
 0x29a   :  { %v1031_v11 = vadd.f32 %v1030_v10, %v3273_v18  ;;  %1372 = vmatprep.mubr.f32.mxu1 %v1182_v7  ;;  %v1183_v63 = vmax.f32 %v1029_v9, 0.0 }
 0x29b   :  { %v1034_v12 = vpop.f32.mrf.mxu0  ;;  %1373 = vmatmul.mubr.f32.gmra.mxu1 %v1181_v8 }
 0x29c   :  { %v1184_v13 = vmax.f32 %v1031_v11, 0.0  ;;  %v1035_v14 = vadd.f32 %v1034_v12, %v3270_v16 }
 0x29d   :  { %v1036_v0 = vpop.f32.mrf.mxu0 }
 0x29e   :  { %v1037_v19 = vadd.f32 %v1036_v0, %v3273_v18  ;;  %1377 = vmatprep.mubr.f32.mxu1 %v1184_v13  ;;  %v1185_v24 = vmax.f32 %v1035_v14, 0.0 }
 0x29f   :  { %v1040_v22 = vpop.f32.mrf.mxu0  ;;  %1378 = vmatmul.mubr.f32.gmra.mxu1 %v1183_v63 }
 0x2a0   :  { %v1186_v23 = vmax.f32 %v1037_v19, 0.0  ;;  %v1041_v4 = vadd.f32 %v1040_v22, %v3270_v16 }
 0x2a1   :  { %v1042_v25 = vpop.f32.mrf.mxu0 }
 0x2a2   :  { %v1043_v26 = vadd.f32 %v1042_v25, %v3273_v18  ;;  %1382 = vmatprep.mubr.f32.mxu1 %v1186_v23  ;;  %v1187_v15 = vmax.f32 %v1041_v4, 0.0 }
 0x2a3   :  { %v1046_v27 = vpop.f32.mrf.mxu0  ;;  %1383 = vmatmul.mubr.f32.gmra.mxu1 %v1185_v24 }
 0x2a4   :  { %v1188_v28 = vmax.f32 %v1043_v26, 0.0  ;;  %v1047_v29 = vadd.f32 %v1046_v27, %v3270_v16 }
 0x2a5   :  { %v1048_v17 = vpop.f32.mrf.mxu0 }
 0x2a6   :  { %v1049_v30 = vadd.f32 %v1048_v17, %v3273_v18  ;;  %1387 = vmatprep.mubr.f32.mxu1 %v1188_v28  ;;  %v1189_v33 = vmax.f32 %v1047_v29, 0.0 }
 0x2a7   :  { %v1052_v31 = vpop.f32.mrf.mxu0  ;;  %1388 = vmatmul.mubr.f32.gmra.mxu1 %v1187_v15 }
 0x2a8   :  { %v1190_v32 = vmax.f32 %v1049_v30, 0.0  ;;  %v1053_v34 = vadd.f32 %v1052_v31, %v3270_v16 }
 0x2a9   :  { %v1054_v35 = vpop.f32.mrf.mxu0 }
 0x2aa   :  { %v1055_v36 = vadd.f32 %v1054_v35, %v3273_v18  ;;  %1392 = vmatprep.mubr.f32.mxu1 %v1190_v32  ;;  %v1191_v39 = vmax.f32 %v1053_v34, 0.0 }
 0x2ab   :  { %v1058_v37 = vpop.f32.mrf.mxu0  ;;  %1393 = vmatmul.mubr.f32.gmra.mxu1 %v1189_v33 }
 0x2ac   :  { %v1192_v38 = vmax.f32 %v1055_v36, 0.0  ;;  %v1059_v40 = vadd.f32 %v1058_v37, %v3270_v16 }
 0x2ad   :  { %v1060_v41 = vpop.f32.mrf.mxu0 }
 0x2ae   :  { %v1061_v42 = vadd.f32 %v1060_v41, %v3273_v18  ;;  %1397 = vmatprep.mubr.f32.mxu1 %v1192_v38  ;;  %v1193_v45 = vmax.f32 %v1059_v40, 0.0 }
 0x2af   :  { %v1064_v43 = vpop.f32.mrf.mxu0  ;;  %1398 = vmatmul.mubr.f32.gmra.mxu1 %v1191_v39 }
 0x2b0   :  { %v1194_v44 = vmax.f32 %v1061_v42, 0.0  ;;  %v1065_v46 = vadd.f32 %v1064_v43, %v3270_v16 }
 0x2b1   :  { %v1066_v47 = vpop.f32.mrf.mxu0 }
 0x2b2   :  { %v1067_v48 = vadd.f32 %v1066_v47, %v3273_v18  ;;  %1402 = vmatprep.mubr.f32.mxu1 %v1194_v44  ;;  %v1195_v51 = vmax.f32 %v1065_v46, 0.0 }
 0x2b3   :  { %v1070_v49 = vpop.f32.mrf.mxu0  ;;  %1403 = vmatmul.mubr.f32.gmra.mxu1 %v1193_v45 }
 0x2b4   :  { %v1196_v50 = vmax.f32 %v1067_v48, 0.0  ;;  %v1071_v52 = vadd.f32 %v1070_v49, %v3270_v16 }
 0x2b5   :  { %v1072_v53 = vpop.f32.mrf.mxu0 }
 0x2b6   :  { %v1073_v54 = vadd.f32 %v1072_v53, %v3273_v18  ;;  %1407 = vmatprep.mubr.f32.mxu1 %v1196_v50  ;;  %v1197_v57 = vmax.f32 %v1071_v52, 0.0 }
 0x2b7   :  { %v1076_v55 = vpop.f32.mrf.mxu0  ;;  %1408 = vmatmul.mubr.f32.gmra.mxu1 %v1195_v51 }
 0x2b8   :  { %v1198_v56 = vmax.f32 %v1073_v54, 0.0  ;;  %v1077_v20 = vadd.f32 %v1076_v55, %v3270_v16 }
 0x2b9   :  { %v1078_v21 = vpop.f32.mrf.mxu0 }
 0x2ba   :  { %v1079_v58 = vadd.f32 %v1078_v21, %v3273_v18  ;;  %1412 = vmatprep.mubr.f32.mxu1 %v1198_v56  ;;  %v1199_v61 = vmax.f32 %v1077_v20, 0.0 }
 0x2bb   :  { %v1082_v59 = vpop.f32.mrf.mxu0  ;;  %1413 = vmatmul.mubr.f32.gmra.mxu1 %v1197_v57 }
 0x2bc   :  { %v1200_v60 = vmax.f32 %v1079_v58, 0.0  ;;  %v1083_v62 = vadd.f32 %v1082_v59, %v3270_v16 }
 0x2bd   :  { %v1084_v1 = vpop.f32.mrf.mxu0 }
 0x2be   :  { %v1085_v2 = vadd.f32 %v1084_v1, %v3273_v18  ;;  %1417 = vmatprep.mubr.f32.mxu1 %v1200_v60  ;;  %v1201_v6 = vmax.f32 %v1083_v62, 0.0 }
 0x2bf   :  { %v1088_v3 = vpop.f32.mrf.mxu0  ;;  %1418 = vmatmul.mubr.f32.gmra.mxu1 %v1199_v61 }
 0x2c0   :  { %v1202_v5 = vmax.f32 %v1085_v2, 0.0  ;;  %v1089_v7 = vadd.f32 %v1088_v3, %v3270_v16 }
 0x2c1   :  { %v1090_v8 = vpop.f32.mrf.mxu0 }
 0x2c2   :  { %v1091_v9 = vadd.f32 %v1090_v8, %v3273_v18  ;;  %1422 = vmatprep.mubr.f32.mxu1 %v1202_v5  ;;  %v1203_v12 = vmax.f32 %v1089_v7, 0.0 }
 0x2c3   :  { %v1094_v10 = vpop.f32.mrf.mxu0  ;;  %1423 = vmatmul.mubr.f32.gmra.mxu1 %v1201_v6 }
 0x2c4   :  { %v1204_v11 = vmax.f32 %v1091_v9, 0.0  ;;  %v1095_v13 = vadd.f32 %v1094_v10, %v3270_v16 }
 0x2c5   :  { %v1096_v63 = vpop.f32.mrf.mxu0 }
 0x2c6   :  { %v1097_v14 = vadd.f32 %v1096_v63, %v3273_v18  ;;  %1427 = vmatprep.mubr.f32.mxu1 %v1204_v11  ;;  %v1205_v22 = vmax.f32 %v1095_v13, 0.0 }
 0x2c7   :  { %v1100_v0 = vpop.f32.mrf.mxu0  ;;  %1428 = vmatmul.mubr.f32.gmra.mxu1 %v1203_v12 }
 0x2c8   :  { %v1206_v19 = vmax.f32 %v1097_v14, 0.0  ;;  %v1101_v23 = vadd.f32 %v1100_v0, %v3270_v16 }
 0x2c9   :  { %v1102_v24 = vpop.f32.mrf.mxu0 }
 0x2ca   :  { %v1103_v4 = vadd.f32 %v1102_v24, %v3273_v18  ;;  %1432 = vmatprep.mubr.f32.mxu1 %v1206_v19  ;;  %v1207_v27 = vmax.f32 %v1101_v23, 0.0 }
 0x2cb   :  { %v1106_v25 = vpop.f32.mrf.mxu0  ;;  %1433 = vmatmul.mubr.f32.gmra.mxu1 %v1205_v22 }
 0x2cc   :  { %v1208_v26 = vmax.f32 %v1103_v4, 0.0  ;;  %v1107_v28 = vadd.f32 %v1106_v25, %v3270_v16  ;;  %v3342_v25 = vld [vmem:[%s3388_s9] ss:$0 sm:$0xff]  ;;  %s1989_s9 = smov [#allocation2]  }
 0x2cd   :  { %v1108_v15 = vpop.f32.mrf.mxu0  ;;  %s1754_s17 = sshll.u32 %s1989_s9, 4  ;;  %s1755_s17 = int_to_ptr.vmem [resolvable:$true] %s1754_s17 }
 0x2ce   :  { %v1109_v29 = vadd.f32 %v1108_v15, %v3273_v18  ;;  %1437 = vmatprep.mubr.f32.mxu1 %v1208_v26  ;;  %v1209_v31 = vmax.f32 %v1107_v28, 0.0  ;;  %s1966_s3 = scalar_lea.vmem %s1755_s17, 4096  ;;  %p1971_p1 = scmp.lt.s32.totalorder %s1755_s17, %s1755_s17 }
 0x2cf   :  { %v1112_v17 = vpop.f32.mrf.mxu0  ;;  %1438 = vmatmul.mubr.f32.gmra.mxu1 %v1207_v27  ;;  %p1967_p0 = scmp.ne.s32.totalorder %s1755_s17, %s1966_s3  ;;  %p1972_p2 = scmp.lt.s32.totalorder %s1966_s3, %s1966_s3 }
 0x2d0   :  { %v1210_v30 = vmax.f32 %v1109_v29, 0.0  ;;  %v1113_v32 = vadd.f32 %v1112_v17, %v3270_v16 }
 0x2d1   :  { %v1114_v33 = vpop.f32.mrf.mxu0  ;;  %p1973_p3 = por %p1972_p2, %p1971_p1 }
 0x2d2   :  { %v1115_v34 = vadd.f32 %v1114_v33, %v3273_v18  ;;  %1442 = vmatprep.mubr.f32.mxu1 %v1210_v30  ;;  %v1211_v37 = vmax.f32 %v1113_v32, 0.0 }
 0x2d3   :  { %v1118_v35 = vpop.f32.mrf.mxu0  ;;  %1443 = vmatmul.mubr.f32.gmra.mxu1 %v1209_v31  ;;  %p1974_p4 = pnand %p1973_p3, %p1967_p0 }
 0x2d4   :  { %v1212_v36 = vmax.f32 %v1115_v34, 0.0  ;;  %v1119_v38 = vadd.f32 %v1118_v35, %v3270_v16 }
 0x2d5   :  { %v1120_v39 = vpop.f32.mrf.mxu0 }
 0x2d6   :  { %v1121_v40 = vadd.f32 %v1120_v39, %v3273_v18  ;;  %1447 = vmatprep.mubr.f32.mxu1 %v1212_v36  ;;  %v1213_v43 = vmax.f32 %v1119_v38, 0.0 }
 0x2d7   :  { %v1124_v41 = vpop.f32.mrf.mxu0  ;;  %1448 = vmatmul.mubr.f32.gmra.mxu1 %v1211_v37 }
 0x2d8   :  { %v1214_v42 = vmax.f32 %v1121_v40, 0.0  ;;  %v1125_v44 = vadd.f32 %v1124_v41, %v3270_v16 }
 0x2d9   :  { %v1126_v45 = vpop.f32.mrf.mxu0 }
 0x2da   :  { %v1127_v46 = vadd.f32 %v1126_v45, %v3273_v18  ;;  %1452 = vmatprep.mubr.f32.mxu1 %v1214_v42  ;;  %v1215_v49 = vmax.f32 %v1125_v44, 0.0 }
 0x2db   :  { %v1130_v47 = vpop.f32.mrf.mxu0  ;;  %1453 = vmatmul.mubr.f32.gmra.mxu1 %v1213_v43 }
 0x2dc   :  { %v1216_v48 = vmax.f32 %v1127_v46, 0.0  ;;  %v1131_v50 = vadd.f32 %v1130_v47, %v3270_v16 }
 0x2dd   :  { %v1132_v51 = vpop.f32.mrf.mxu0 }
 0x2de   :  { %v1133_v52 = vadd.f32 %v1132_v51, %v3273_v18  ;;  %1457 = vmatprep.mubr.f32.mxu1 %v1216_v48  ;;  %v1217_v55 = vmax.f32 %v1131_v50, 0.0 }
 0x2df   :  { %v1136_v53 = vpop.f32.mrf.mxu0  ;;  %1458 = vmatmul.mubr.f32.gmra.mxu1 %v1215_v49 }
 0x2e0   :  { %v1218_v54 = vmax.f32 %v1133_v52, 0.0  ;;  %v1137_v56 = vadd.f32 %v1136_v53, %v3270_v16 }
 0x2e1   :  { %v1138_v57 = vpop.f32.mrf.mxu0 }
 0x2e2   :  { %v1139_v20 = vadd.f32 %v1138_v57, %v3273_v18  ;;  %1462 = vmatprep.mubr.f32.mxu1 %v1218_v54  ;;  %v1219_v59 = vmax.f32 %v1137_v56, 0.0 }
 0x2e3   :  { %v1142_v21 = vpop.f32.mrf.mxu0  ;;  %1463 = vmatmul.mubr.f32.gmra.mxu1 %v1217_v55 }
 0x2e4   :  { %v1220_v58 = vmax.f32 %v1139_v20, 0.0  ;;  %v1143_v60 = vadd.f32 %v1142_v21, %v3270_v16 }
 0x2e5   :  { %v1144_v61 = vpop.f32.mrf.mxu0 }
 0x2e6   :  { %v1145_v62 = vadd.f32 %v1144_v61, %v3273_v18  ;;  %1467 = vmatprep.mubr.f32.mxu1 %v1220_v58  ;;  %v1221_v3 = vmax.f32 %v1143_v60, 0.0 }
 0x2e7   :  { %v1148_v1 = vpop.f32.mrf.mxu0  ;;  %1468 = vmatmul.mubr.f32.gmra.mxu1 %v1219_v59 }
 0x2e8   :  { %v1222_v2 = vmax.f32 %v1145_v62, 0.0  ;;  %v1149_v5 = vadd.f32 %v1148_v1, %v3270_v16 }
 0x2e9   :  { %v1150_v6 = vpop.f32.mrf.mxu0 }
 0x2ea   :  { %v1151_v7 = vadd.f32 %v1150_v6, %v3273_v18  ;;  %1472 = vmatprep.mubr.f32.mxu1 %v1222_v2  ;;  %v1223_v10 = vmax.f32 %v1149_v5, 0.0 }
 0x2eb   :  { %v1154_v8 = vpop.f32.mrf.mxu0  ;;  %1473 = vmatmul.mubr.f32.gmra.mxu1 %v1221_v3 }
 0x2ec   :  { %v1224_v9 = vmax.f32 %v1151_v7, 0.0  ;;  %v1155_v11 = vadd.f32 %v1154_v8, %v3270_v16 }
 0x2ed   :  { %v1156_v12 = vpop.f32.mrf.mxu0 }
 0x2ee   :  { %v1157_v13 = vadd.f32 %v1156_v12, %v3273_v18  ;;  %1477 = vmatprep.mubr.f32.mxu1 %v1224_v9  ;;  %v1225_v0 = vmax.f32 %v1155_v11, 0.0 }
 0x2ef   :  { %v1160_v63 = vpop.f32.mrf.mxu0  ;;  %1478 = vmatmul.mubr.f32.gmra.mxu1 %v1223_v10 }
 0x2f0   :  { %v1226_v14 = vmax.f32 %v1157_v13, 0.0  ;;  %v1161_v19 = vadd.f32 %v1160_v63, %v3270_v16 }
 0x2f1   :  { %v1162_v22 = vpop.f32.mrf.mxu0 }
 0x2f2   :  { %v1163_v23 = vadd.f32 %v1162_v22, %v3273_v18  ;;  %1482 = vmatprep.mubr.f32.mxu1 %v1226_v14  ;;  %v1227_v4 = vmax.f32 %v1161_v19, 0.0 }
 0x2f3   :  { %1483 = vmatmul.mubr.f32.gmra.mxu1 %v1225_v0 }
 0x2f4   :  { %v1228_v24 = vmax.f32 %v1163_v23, 0.0 }
 0x2f6   :  { %1487 = vmatprep.mubr.f32.mxu1 %v1228_v24 }
 0x2f7   :  { %1488 = vmatmul.mubr.f32.gmra.mxu1 %v1227_v4 }
 0x33b   :  { %v1334_v26 = vpop.f32.mrf.mxu0 }
 0x33c   :  { %v1335_v27 = vadd.f32 %v3342_v25, %v1334_v26 }
 0x33d   :  { %v1336_v28 = vpop.f32.mrf.mxu0 }
 0x33e   :  { %v1493_v15 = vsub.f32 0.0, %v1335_v27 }
 0x33f   :  { %v1339_v16 = vpop.f32.mrf.mxu0 }
 0x340   :  { %v1525_v29 = vmul.f32 1.442695, %v1493_v15  ;;  %v1340_v18 = vadd.f32 %v3342_v25, %v1339_v16 }
 0x341   :  { %v1341_v17 = vpop.f32.mrf.mxu0 }
 0x342   :  { %1838 = vpow2.f32 %v1525_v29  ;;  %v1494_v30 = vsub.f32 0.0, %v1340_v18 }
 0x343   :  { %v1344_v31 = vpop.f32.mrf.mxu0 }
 0x344   :  { %v1527_v32 = vmul.f32 1.442695, %v1494_v30  ;;  %v1345_v33 = vadd.f32 %v3342_v25, %v1344_v31 }
 0x345   :  { %v1346_v34 = vpop.f32.mrf.mxu0 }
 0x346   :  { %1840 = vpow2.f32 %v1527_v32  ;;  %v1495_v35 = vsub.f32 0.0, %v1345_v33 }
 0x347   :  { %v1349_v36 = vpop.f32.mrf.mxu0 }
 0x348   :  { %v1529_v37 = vmul.f32 1.442695, %v1495_v35  ;;  %v1350_v38 = vadd.f32 %v3342_v25, %v1349_v36 }
 0x349   :  { %v1351_v39 = vpop.f32.mrf.mxu0 }
 0x34a   :  { %1842 = vpow2.f32 %v1529_v37  ;;  %v1496_v40 = vsub.f32 0.0, %v1350_v38 }
 0x34b   :  { %v1354_v41 = vpop.f32.mrf.mxu1 }
 0x34c   :  { %v1531_v42 = vmul.f32 1.442695, %v1496_v40  ;;  %v1355_v43 = vadd.f32 %v3342_v25, %v1354_v41 }
 0x34d   :  { %v1356_v44 = vpop.f32.mrf.mxu1 }
 0x34e   :  { %1844 = vpow2.f32 %v1531_v42  ;;  %v1497_v45 = vsub.f32 0.0, %v1355_v43 }
 0x34f   :  { %v1839_v46 = vpop.eup %1838  ;;  %v1359_v47 = vpop.f32.mrf.mxu1 }
 0x350   :  { %v1589_v48 = vadd.f32 1.0, %v1839_v46  ;;  %v1533_v49 = vmul.f32 1.442695, %v1497_v45  ;;  %v1360_v50 = vadd.f32 %v3342_v25, %v1359_v47 }
 0x351   :  { %v1361_v51 = vpop.f32.mrf.mxu1 }
 0x352   :  { %1846 = vrcp.f32 %v1589_v48  ;;  %v1498_v52 = vsub.f32 0.0, %v1360_v50 }
 0x353   :  { %v1841_v53 = vpop.eup %1840  ;;  %1848 = vpow2.f32 %v1533_v49  ;;  %v1364_v54 = vpop.f32.mrf.mxu1 }
 0x354   :  { %v1590_v55 = vadd.f32 1.0, %v1841_v53  ;;  %v1535_v56 = vmul.f32 1.442695, %v1498_v52  ;;  %v1365_v57 = vadd.f32 %v3342_v25, %v1364_v54 }
 0x355   :  { %v1366_v20 = vpop.f32.mrf.mxu1 }
 0x356   :  { %1850 = vrcp.f32 %v1590_v55  ;;  %v1499_v21 = vsub.f32 0.0, %v1365_v57 }
 0x357   :  { %v1843_v58 = vpop.eup %1842  ;;  %1852 = vpow2.f32 %v1535_v56  ;;  %v1369_v59 = vpop.f32.mrf.mxu1 }
 0x358   :  { %v1591_v60 = vadd.f32 1.0, %v1843_v58  ;;  %v1537_v61 = vmul.f32 1.442695, %v1499_v21  ;;  %v1370_v62 = vadd.f32 %v3342_v25, %v1369_v59 }
 0x359   :  { %v1371_v1 = vpop.f32.mrf.mxu1 }
 0x35a   :  { %1854 = vrcp.f32 %v1591_v60  ;;  %v1500_v2 = vsub.f32 0.0, %v1370_v62 }
 0x35b   :  { %v1845_v3 = vpop.eup %1844  ;;  %1856 = vpow2.f32 %v1537_v61  ;;  %v1374_v5 = vpop.f32.mrf.mxu1 }
 0x35c   :  { %v1592_v6 = vadd.f32 1.0, %v1845_v3  ;;  %v1539_v7 = vmul.f32 1.442695, %v1500_v2  ;;  %v1375_v8 = vadd.f32 %v3342_v25, %v1374_v5 }
 0x35d   :  { %v1376_v9 = vpop.f32.mrf.mxu1 }
 0x35e   :  { %1858 = vrcp.f32 %v1592_v6  ;;  %v1501_v10 = vsub.f32 0.0, %v1375_v8 }
 0x35f   :  { %v1847_v11 = vpop.eup %1846  ;;  %1860 = vpow2.f32 %v1539_v7  ;;  %v1379_v12 = vpop.f32.mrf.mxu1 }
 0x360   :  { %v1849_v13 = vpop.eup %1848  ;;  %1653 = vst [vmem:[#allocation2] sm:$0xff] %v1847_v11  ;;  %v1541_v63 = vmul.f32 1.442695, %v1501_v10  ;;  %v1380_v14 = vadd.f32 %v3342_v25, %v1379_v12 }
 0x361   :  { %v1593_v0 = vadd.f32 1.0, %v1849_v13  ;;  %v1381_v19 = vpop.f32.mrf.mxu1 }
 0x362   :  { %1862 = vpow2.f32 %v1541_v63  ;;  %v1502_v22 = vsub.f32 0.0, %v1380_v14 }
 0x363   :  { %v1851_v23 = vpop.eup %1850  ;;  %1864 = vrcp.f32 %v1593_v0  ;;  %v1384_v24 = vpop.f32.mrf.mxu1 }
 0x364   :  { %v1853_v4 = vpop.eup %1852  ;;  %1654 = vst [vmem:[#allocation2 + $0x8] sm:$0xff] %v1851_v23  ;;  %v1543_v26 = vmul.f32 1.442695, %v1502_v22  ;;  %v1385_v27 = vadd.f32 %v3342_v25, %v1384_v24 }
 0x365   :  { %v1594_v28 = vadd.f32 1.0, %v1853_v4  ;;  %v1386_v15 = vpop.f32.mrf.mxu1 }
 0x366   :  { %1866 = vpow2.f32 %v1543_v26  ;;  %v1503_v16 = vsub.f32 0.0, %v1385_v27 }
 0x367   :  { %v1855_v29 = vpop.eup %1854  ;;  %1868 = vrcp.f32 %v1594_v28  ;;  %v1389_v18 = vpop.f32.mrf.mxu1 }
 0x368   :  { %v1857_v17 = vpop.eup %1856  ;;  %1655 = vst [vmem:[#allocation2 + $0x10] sm:$0xff] %v1855_v29  ;;  %v1545_v30 = vmul.f32 1.442695, %v1503_v16  ;;  %v1390_v31 = vadd.f32 %v3342_v25, %v1389_v18 }
 0x369   :  { %v1595_v32 = vadd.f32 1.0, %v1857_v17  ;;  %v1391_v33 = vpop.f32.mrf.mxu1 }
 0x36a   :  { %1870 = vpow2.f32 %v1545_v30  ;;  %v1504_v34 = vsub.f32 0.0, %v1390_v31 }
 0x36b   :  { %v1859_v35 = vpop.eup %1858  ;;  %1872 = vrcp.f32 %v1595_v32  ;;  %v1394_v36 = vpop.f32.mrf.mxu1 }
 0x36c   :  { %v1861_v37 = vpop.eup %1860  ;;  %1656 = vst [vmem:[#allocation2 + $0x18] sm:$0xff] %v1859_v35  ;;  %v1547_v38 = vmul.f32 1.442695, %v1504_v34  ;;  %v1395_v39 = vadd.f32 %v3342_v25, %v1394_v36 }
 0x36d   :  { %v1596_v40 = vadd.f32 1.0, %v1861_v37  ;;  %v1396_v41 = vpop.f32.mrf.mxu1 }
 0x36e   :  { %1874 = vpow2.f32 %v1547_v38  ;;  %v1505_v42 = vsub.f32 0.0, %v1395_v39 }
 0x36f   :  { %v1863_v43 = vpop.eup %1862  ;;  %1876 = vrcp.f32 %v1596_v40  ;;  %v1399_v44 = vpop.f32.mrf.mxu1 }
 0x370   :  { %v1865_v45 = vpop.eup %1864  ;;  %v1597_v46 = vadd.f32 1.0, %v1863_v43  ;;  %v1549_v47 = vmul.f32 1.442695, %v1505_v42  ;;  %v1400_v48 = vadd.f32 %v3342_v25, %v1399_v44 }
 0x371   :  { %1657 = vst [vmem:[#allocation2 + $0x20] sm:$0xff] %v1865_v45  ;;  %v1401_v49 = vpop.f32.mrf.mxu1 }
 0x372   :  { %1878 = vrcp.f32 %v1597_v46  ;;  %v1506_v50 = vsub.f32 0.0, %v1400_v48 }
 0x373   :  { %v1867_v51 = vpop.eup %1866  ;;  %1880 = vpow2.f32 %v1549_v47  ;;  %v1404_v52 = vpop.f32.mrf.mxu1 }
 0x374   :  { %v1869_v53 = vpop.eup %1868  ;;  %v1598_v54 = vadd.f32 1.0, %v1867_v51  ;;  %v1551_v55 = vmul.f32 1.442695, %v1506_v50  ;;  %v1405_v56 = vadd.f32 %v3342_v25, %v1404_v52 }
 0x375   :  { %1658 = vst [vmem:[#allocation2 + $0x28] sm:$0xff] %v1869_v53  ;;  %v1406_v57 = vpop.f32.mrf.mxu1 }
 0x376   :  { %1882 = vrcp.f32 %v1598_v54  ;;  %v1507_v20 = vsub.f32 0.0, %v1405_v56 }
 0x377   :  { %v1871_v21 = vpop.eup %1870  ;;  %1884 = vpow2.f32 %v1551_v55  ;;  %v1409_v58 = vpop.f32.mrf.mxu1 }
 0x378   :  { %v1873_v59 = vpop.eup %1872  ;;  %v1599_v60 = vadd.f32 1.0, %v1871_v21  ;;  %v1553_v61 = vmul.f32 1.442695, %v1507_v20  ;;  %v1410_v62 = vadd.f32 %v3342_v25, %v1409_v58 }
 0x379   :  { %1659 = vst [vmem:[#allocation2 + $0x30] sm:$0xff] %v1873_v59  ;;  %v1411_v1 = vpop.f32.mrf.mxu1 }
 0x37a   :  { %1886 = vrcp.f32 %v1599_v60  ;;  %v1508_v2 = vsub.f32 0.0, %v1410_v62 }
 0x37b   :  { %v1875_v3 = vpop.eup %1874  ;;  %1888 = vpow2.f32 %v1553_v61  ;;  %v1414_v5 = vpop.f32.mrf.mxu1 }
 0x37c   :  { %v1877_v6 = vpop.eup %1876  ;;  %v1600_v7 = vadd.f32 1.0, %v1875_v3  ;;  %v1555_v8 = vmul.f32 1.442695, %v1508_v2  ;;  %v1415_v9 = vadd.f32 %v3342_v25, %v1414_v5 }
 0x37d   :  { %1660 = vst [vmem:[#allocation2 + $0x38] sm:$0xff] %v1877_v6  ;;  %v1416_v10 = vpop.f32.mrf.mxu1 }
 0x37e   :  { %1890 = vrcp.f32 %v1600_v7  ;;  %v1509_v11 = vsub.f32 0.0, %v1415_v9 }
 0x37f   :  { %v1879_v12 = vpop.eup %1878  ;;  %1892 = vpow2.f32 %v1555_v8  ;;  %v1419_v13 = vpop.f32.mrf.mxu1 }
 0x380   :  { %v1881_v63 = vpop.eup %1880  ;;  %1661 = vst [vmem:[#allocation2 + $0x40] sm:$0xff] %v1879_v12  ;;  %v1557_v14 = vmul.f32 1.442695, %v1509_v11  ;;  %v1420_v0 = vadd.f32 %v3342_v25, %v1419_v13 }
 0x381   :  { %v1601_v19 = vadd.f32 1.0, %v1881_v63  ;;  %v1421_v22 = vpop.f32.mrf.mxu1 }
 0x382   :  { %1894 = vpow2.f32 %v1557_v14  ;;  %v1510_v23 = vsub.f32 0.0, %v1420_v0 }
 0x383   :  { %v1883_v24 = vpop.eup %1882  ;;  %1896 = vrcp.f32 %v1601_v19  ;;  %v1424_v4 = vpop.f32.mrf.mxu1 }
 0x384   :  { %v1885_v26 = vpop.eup %1884  ;;  %1662 = vst [vmem:[#allocation2 + $0x48] sm:$0xff] %v1883_v24  ;;  %v1559_v27 = vmul.f32 1.442695, %v1510_v23  ;;  %v1425_v28 = vadd.f32 %v3342_v25, %v1424_v4 }
 0x385   :  { %v1602_v15 = vadd.f32 1.0, %v1885_v26  ;;  %v1426_v16 = vpop.f32.mrf.mxu1 }
 0x386   :  { %1898 = vpow2.f32 %v1559_v27  ;;  %v1511_v29 = vsub.f32 0.0, %v1425_v28 }
 0x387   :  { %v1887_v18 = vpop.eup %1886  ;;  %1900 = vrcp.f32 %v1602_v15  ;;  %v1429_v17 = vpop.f32.mrf.mxu1 }
 0x388   :  { %v1889_v30 = vpop.eup %1888  ;;  %1663 = vst [vmem:[#allocation2 + $0x50] sm:$0xff] %v1887_v18  ;;  %v1561_v31 = vmul.f32 1.442695, %v1511_v29  ;;  %v1430_v32 = vadd.f32 %v3342_v25, %v1429_v17 }
 0x389   :  { %v1603_v33 = vadd.f32 1.0, %v1889_v30  ;;  %v1431_v34 = vpop.f32.mrf.mxu1 }
 0x38a   :  { %1902 = vpow2.f32 %v1561_v31  ;;  %v1512_v35 = vsub.f32 0.0, %v1430_v32 }
 0x38b   :  { %v1891_v36 = vpop.eup %1890  ;;  %1904 = vrcp.f32 %v1603_v33  ;;  %v1434_v37 = vpop.f32.mrf.mxu1 }
 0x38c   :  { %v1893_v38 = vpop.eup %1892  ;;  %1664 = vst [vmem:[#allocation2 + $0x58] sm:$0xff] %v1891_v36  ;;  %v1563_v39 = vmul.f32 1.442695, %v1512_v35  ;;  %v1435_v40 = vadd.f32 %v3342_v25, %v1434_v37 }
 0x38d   :  { %v1604_v41 = vadd.f32 1.0, %v1893_v38  ;;  %v1436_v42 = vpop.f32.mrf.mxu1 }
 0x38e   :  { %1906 = vpow2.f32 %v1563_v39  ;;  %v1513_v43 = vsub.f32 0.0, %v1435_v40 }
 0x38f   :  { %v1895_v44 = vpop.eup %1894  ;;  %1908 = vrcp.f32 %v1604_v41  ;;  %v1439_v45 = vpop.f32.mrf.mxu1 }
 0x390   :  { %v1897_v46 = vpop.eup %1896  ;;  %v1605_v47 = vadd.f32 1.0, %v1895_v44  ;;  %v1565_v48 = vmul.f32 1.442695, %v1513_v43  ;;  %v1440_v49 = vadd.f32 %v3342_v25, %v1439_v45 }
 0x391   :  { %1665 = vst [vmem:[#allocation2 + $0x60] sm:$0xff] %v1897_v46  ;;  %v1441_v50 = vpop.f32.mrf.mxu1 }
 0x392   :  { %1910 = vrcp.f32 %v1605_v47  ;;  %v1514_v51 = vsub.f32 0.0, %v1440_v49 }
 0x393   :  { %v1899_v52 = vpop.eup %1898  ;;  %1912 = vpow2.f32 %v1565_v48  ;;  %v1444_v53 = vpop.f32.mrf.mxu1 }
 0x394   :  { %v1901_v54 = vpop.eup %1900  ;;  %v1606_v55 = vadd.f32 1.0, %v1899_v52  ;;  %v1567_v56 = vmul.f32 1.442695, %v1514_v51  ;;  %v1445_v57 = vadd.f32 %v3342_v25, %v1444_v53 }
 0x395   :  { %1666 = vst [vmem:[#allocation2 + $0x68] sm:$0xff] %v1901_v54  ;;  %v1446_v20 = vpop.f32.mrf.mxu1 }
 0x396   :  { %1914 = vrcp.f32 %v1606_v55  ;;  %v1515_v21 = vsub.f32 0.0, %v1445_v57 }
 0x397   :  { %v1903_v58 = vpop.eup %1902  ;;  %1916 = vpow2.f32 %v1567_v56  ;;  %v1449_v59 = vpop.f32.mrf.mxu1 }
 0x398   :  { %v1905_v60 = vpop.eup %1904  ;;  %v1607_v61 = vadd.f32 1.0, %v1903_v58  ;;  %v1569_v62 = vmul.f32 1.442695, %v1515_v21  ;;  %v1450_v1 = vadd.f32 %v3342_v25, %v1449_v59 }
 0x399   :  { %1667 = vst [vmem:[#allocation2 + $0x70] sm:$0xff] %v1905_v60  ;;  %v1451_v2 = vpop.f32.mrf.mxu1 }
 0x39a   :  { %1918 = vrcp.f32 %v1607_v61  ;;  %v1516_v3 = vsub.f32 0.0, %v1450_v1 }
 0x39b   :  { %v1907_v5 = vpop.eup %1906  ;;  %1920 = vpow2.f32 %v1569_v62  ;;  %v1454_v6 = vpop.f32.mrf.mxu1 }
 0x39c   :  { %v1909_v7 = vpop.eup %1908  ;;  %v1608_v8 = vadd.f32 1.0, %v1907_v5  ;;  %v1571_v9 = vmul.f32 1.442695, %v1516_v3  ;;  %v1455_v10 = vadd.f32 %v3342_v25, %v1454_v6 }
 0x39d   :  { %1668 = vst [vmem:[#allocation2 + $0x78] sm:$0xff] %v1909_v7  ;;  %v1456_v11 = vpop.f32.mrf.mxu1 }
 0x39e   :  { %1922 = vrcp.f32 %v1608_v8  ;;  %v1517_v12 = vsub.f32 0.0, %v1455_v10 }
 0x39f   :  { %v1911_v13 = vpop.eup %1910  ;;  %1924 = vpow2.f32 %v1571_v9  ;;  %v1459_v63 = vpop.f32.mrf.mxu1 }
 0x3a0   :  { %v1913_v14 = vpop.eup %1912  ;;  %1669 = vst [vmem:[#allocation2 + $0x80] sm:$0xff] %v1911_v13  ;;  %v1573_v0 = vmul.f32 1.442695, %v1517_v12  ;;  %v1460_v19 = vadd.f32 %v3342_v25, %v1459_v63 }
 0x3a1   :  { %v1609_v22 = vadd.f32 1.0, %v1913_v14  ;;  %v1461_v23 = vpop.f32.mrf.mxu1 }
 0x3a2   :  { %1926 = vpow2.f32 %v1573_v0  ;;  %v1518_v24 = vsub.f32 0.0, %v1460_v19 }
 0x3a3   :  { %v1915_v4 = vpop.eup %1914  ;;  %1928 = vrcp.f32 %v1609_v22  ;;  %v1464_v26 = vpop.f32.mrf.mxu1 }
 0x3a4   :  { %v1917_v27 = vpop.eup %1916  ;;  %1670 = vst [vmem:[#allocation2 + $0x88] sm:$0xff] %v1915_v4  ;;  %v1575_v28 = vmul.f32 1.442695, %v1518_v24  ;;  %v1465_v15 = vadd.f32 %v3342_v25, %v1464_v26 }
 0x3a5   :  { %v1610_v16 = vadd.f32 1.0, %v1917_v27  ;;  %v1466_v29 = vpop.f32.mrf.mxu1 }
 0x3a6   :  { %1930 = vpow2.f32 %v1575_v28  ;;  %v1519_v18 = vsub.f32 0.0, %v1465_v15 }
 0x3a7   :  { %v1919_v17 = vpop.eup %1918  ;;  %1932 = vrcp.f32 %v1610_v16  ;;  %v1469_v30 = vpop.f32.mrf.mxu1 }
 0x3a8   :  { %v1921_v31 = vpop.eup %1920  ;;  %1671 = vst [vmem:[#allocation2 + $0x90] sm:$0xff] %v1919_v17  ;;  %v1577_v32 = vmul.f32 1.442695, %v1519_v18  ;;  %v1470_v33 = vadd.f32 %v3342_v25, %v1469_v30 }
 0x3a9   :  { %v1611_v34 = vadd.f32 1.0, %v1921_v31  ;;  %v1471_v35 = vpop.f32.mrf.mxu1 }
 0x3aa   :  { %1934 = vpow2.f32 %v1577_v32  ;;  %v1520_v36 = vsub.f32 0.0, %v1470_v33 }
 0x3ab   :  { %v1923_v37 = vpop.eup %1922  ;;  %1936 = vrcp.f32 %v1611_v34  ;;  %v1474_v38 = vpop.f32.mrf.mxu1 }
 0x3ac   :  { %v1925_v39 = vpop.eup %1924  ;;  %1672 = vst [vmem:[#allocation2 + $0x98] sm:$0xff] %v1923_v37  ;;  %v1579_v40 = vmul.f32 1.442695, %v1520_v36  ;;  %v1475_v41 = vadd.f32 %v3342_v25, %v1474_v38 }
 0x3ad   :  { %v1612_v42 = vadd.f32 1.0, %v1925_v39  ;;  %v1476_v43 = vpop.f32.mrf.mxu1 }
 0x3ae   :  { %1938 = vpow2.f32 %v1579_v40  ;;  %v1521_v44 = vsub.f32 0.0, %v1475_v41 }
 0x3af   :  { %v1927_v45 = vpop.eup %1926  ;;  %1940 = vrcp.f32 %v1612_v42  ;;  %v1479_v46 = vpop.f32.mrf.mxu1 }
 0x3b0   :  { %v1929_v47 = vpop.eup %1928  ;;  %v1613_v48 = vadd.f32 1.0, %v1927_v45  ;;  %v1581_v49 = vmul.f32 1.442695, %v1521_v44  ;;  %v1480_v50 = vadd.f32 %v3342_v25, %v1479_v46 }
 0x3b1   :  { %1673 = vst [vmem:[#allocation2 + $0xa0] sm:$0xff] %v1929_v47  ;;  %v1481_v51 = vpop.f32.mrf.mxu1 }
 0x3b2   :  { %1942 = vrcp.f32 %v1613_v48  ;;  %v1522_v52 = vsub.f32 0.0, %v1480_v50 }
 0x3b3   :  { %v1931_v53 = vpop.eup %1930  ;;  %1944 = vpow2.f32 %v1581_v49  ;;  %v1484_v54 = vpop.f32.mrf.mxu1 }
 0x3b4   :  { %v1933_v55 = vpop.eup %1932  ;;  %v1614_v56 = vadd.f32 1.0, %v1931_v53  ;;  %v1583_v57 = vmul.f32 1.442695, %v1522_v52  ;;  %v1485_v20 = vadd.f32 %v3342_v25, %v1484_v54 }
 0x3b5   :  { %1674 = vst [vmem:[#allocation2 + $0xa8] sm:$0xff] %v1933_v55  ;;  %v1486_v21 = vpop.f32.mrf.mxu1 }
 0x3b6   :  { %1946 = vrcp.f32 %v1614_v56  ;;  %v1523_v58 = vsub.f32 0.0, %v1485_v20 }
 0x3b7   :  { %v1935_v59 = vpop.eup %1934  ;;  %1948 = vpow2.f32 %v1583_v57  ;;  %v1489_v60 = vpop.f32.mrf.mxu1 }
 0x3b8   :  { %v1937_v61 = vpop.eup %1936  ;;  %v1615_v62 = vadd.f32 1.0, %v1935_v59  ;;  %v1585_v1 = vmul.f32 1.442695, %v1523_v58  ;;  %v1490_v2 = vadd.f32 %v3342_v25, %v1489_v60 }
 0x3b9   :  { %1675 = vst [vmem:[#allocation2 + $0xb0] sm:$0xff] %v1937_v61  ;;  %v1491_v3 = vpop.f32.mrf.mxu1 }
 0x3ba   :  { %1950 = vrcp.f32 %v1615_v62  ;;  %v1524_v5 = vsub.f32 0.0, %v1490_v2 }
 0x3bb   :  { %v1939_v6 = vpop.eup %1938  ;;  %1952 = vpow2.f32 %v1585_v1 }
 0x3bc   :  { %v1941_v7 = vpop.eup %1940  ;;  %v1616_v8 = vadd.f32 1.0, %v1939_v6  ;;  %v1587_v9 = vmul.f32 1.442695, %v1524_v5 }
 0x3bd   :  { %1676 = vst [vmem:[#allocation2 + $0xb8] sm:$0xff] %v1941_v7 }
 0x3be   :  { %1954 = vrcp.f32 %v1616_v8 }
 0x3bf   :  { %v1943_v10 = vpop.eup %1942  ;;  %1956 = vpow2.f32 %v1587_v9 }
 0x3c0   :  { %v1945_v11 = vpop.eup %1944  ;;  %1677 = vst [vmem:[#allocation2 + $0xc0] sm:$0xff] %v1943_v10 }
 0x3c1   :  { %v1617_v12 = vadd.f32 1.0, %v1945_v11 }
 0x3c3   :  { %v1947_v13 = vpop.eup %1946  ;;  %1958 = vrcp.f32 %v1617_v12 }
 0x3c4   :  { %v1949_v63 = vpop.eup %1948  ;;  %1678 = vst [vmem:[#allocation2 + $0xc8] sm:$0xff] %v1947_v13 }
 0x3c5   :  { %v1618_v25 = vadd.f32 1.0, %v1949_v63 }
 0x3c7   :  { %v1951_v14 = vpop.eup %1950  ;;  %1960 = vrcp.f32 %v1618_v25 }
 0x3c8   :  { %v1953_v0 = vpop.eup %1952  ;;  %1679 = vst [vmem:[#allocation2 + $0xd0] sm:$0xff] %v1951_v14 }
 0x3c9   :  { %v1619_v19 = vadd.f32 1.0, %v1953_v0 }
 0x3cb   :  { %v1955_v22 = vpop.eup %1954  ;;  %1962 = vrcp.f32 %v1619_v19 }
 0x3cc   :  { %v1957_v23 = vpop.eup %1956  ;;  %1680 = vst [vmem:[#allocation2 + $0xd8] sm:$0xff] %v1955_v22 }
 0x3cd   :  { %v1620_v24 = vadd.f32 1.0, %v1957_v23 }
 0x3cf   :  { %1964 = vrcp.f32 %v1620_v24 }
 0x3d0   :  { %v1959_v4 = vpop.eup %1958 }
 0x3d1   :  { %1681 = vst [vmem:[#allocation2 + $0xe0] sm:$0xff] %v1959_v4 }
 0x3d4   :  { %v1961_v26 = vpop.eup %1960 }
 0x3d5   :  { %1682 = vst [vmem:[#allocation2 + $0xe8] sm:$0xff] %v1961_v26 }
 0x3d8   :  { %v1963_v27 = vpop.eup %1962 }
 0x3d9   :  { %1683 = vst [vmem:[#allocation2 + $0xf0] sm:$0xff] %v1963_v27 }
 0x3dc   :  { %v1965_v28 = vpop.eup %1964 }
 0x3dd   :  { %1684 = vst [vmem:[#allocation2 + $0xf8] sm:$0xff] %v1965_v28 }
 0x3de   :  { %1977 = shalt.err (!%p1974_p4)
}
 0x3df   :  { %s1990_s18 = smov 128   ;;  %s1991_s19 = smov 8  }
 0x3e0   :  { %1760 = dma.vmem_to_hbm [thread:$0]  %s1755_s17, 4096, %s3389_s10, [#allocation3], %s1990_s18, %s1990_s18, %s1991_s19  }
 0x3e1   :  { %1986 = dma.done.wait [#allocation3], 4096  }
 0x3e2   :  { %1987 = vsyncadd [#allocation3], 4294963200 }
 0x3e3   :  { %1768 = vsyncpa [#allocation3], 1 }

</bundles_post_ra>
